<compile_context>
chip_gen: v7x
topology: tpu7x:2x2x1
jax: 0.10.0
libtpu: 0.0.40
codegen_flags: <defaults>
</compile_context>

<pallas_src>
import jax
import jax.numpy as jnp
from jax import lax
from jax.experimental import pallas as pl
from jax.experimental.pallas import tpu as pltpu

# ---------------- small config consistent with RWKV_Tmix_x060.__init__ -------
N_EMBD = 32
DIM_ATT = 32
HEAD_SIZE = 16                       # args.head_size_a
N_HEAD = DIM_ATT // HEAD_SIZE        # 2
N_LAYER = 4
LAYER_ID = 1
D_MIX_LORA = 8
D_DECAY_LORA = 16
HEAD_SIZE_DIVISOR = 8
LN_EPS = 1e-5 * HEAD_SIZE_DIVISOR ** 2

B, T = 2, 8


# ---------------------------- fused Pallas kernel -----------------------------
def _rwkv_tmix_fused_kernel(x_ref, sp_ref, w1_ref, w2bd_ref, wblk_ref,
                            dw2_ref, wo_ref, o_ref):
    f32 = jnp.float32
    bf16 = jnp.bfloat16
    HI = lax.Precision.HIGHEST

    Bg, Tq, C = x_ref.shape
    A = wo_ref.shape[0]
    N = HEAD_SIZE
    H = A // N
    D_DECAY = dw2_ref.shape[0]

    def bdot(a, b):
        # feed the MXU bf16 operands (weights already bf16), accumulate in f32
        return jnp.dot(a.astype(bf16), b, preferred_element_type=f32)

    sp = sp_ref[...]                              # (10, C) packed small params
    maa_x = sp[0:1, :]
    td = sp[6:7, :]                               # time_decay
    gamma = sp[7:8, :]
    beta = sp[8:9, :]
    u = sp[9:10, :]                               # bf16-rounded time_faaaa, flat

    # ---- token shift computed in-kernel (no xx input / extra DMA) ------------
    xb_parts, xx_parts = [], []
    for b in range(Bg):
        xbb = x_ref[b]                            # (T, C)
        prev = jnp.concatenate([jnp.zeros((1, C), f32), xbb[:Tq - 1, :]], axis=0)
        xb_parts.append(xbb)
        xx_parts.append(prev - xbb)
    xb = xb_parts[0] if Bg == 1 else jnp.concatenate(xb_parts, axis=0)   # (R, C)
    xxb = xx_parts[0] if Bg == 1 else jnp.concatenate(xx_parts, axis=0)

    # ---- data-dependent mixing: 5-stream LoRA batched through block-diag W2 --
    xxx = xb + xxb * maa_x
    mix = jnp.tanh(bdot(xxx, w1_ref[...]))        # (R, 5*D_MIX)
    m_all = bdot(mix, w2bd_ref[...])              # (R, 5*C): [mw|mk|mv|mr|mg]

    # all 5 mixed streams as one lane-dense (R, 5C) tile -> ONE fused projection
    X5 = jnp.concatenate(
        [xb + xxb * (sp[1 + j:2 + j, :] + m_all[:, j * C:(j + 1) * C])
         for j in range(5)], axis=1)              # (R, 5C): [xw|xk|xv|xr|xg]
    proj = bdot(X5, wblk_ref[...])                # (R, 4A + D_DECAY): [k|v|r|g|wpre]

    k = proj[:, 0:A]
    v = proj[:, A:2 * A]
    r = proj[:, 2 * A:3 * A]
    glin = proj[:, 3 * A:4 * A]
    wpre = proj[:, 4 * A:4 * A + D_DECAY]

    # SiLU gate: exp + approximate reciprocal both live on the (otherwise idle) EUP
    g = glin * pl.reciprocal(1.0 + jnp.exp(-glin), approx=True)

    ww = bdot(jnp.tanh(wpre), dw2_ref[...])       # decay-LoRA stage 2
    w = td + ww                                   # (R, A)

    # ---- WKV6: bf16 interface (matches the CUDA op), f32 internal math -------
    rf = r.astype(bf16).astype(f32)
    kf = k.astype(bf16).astype(f32)
    vf = v.astype(bf16).astype(f32)
    wf = w.astype(bf16).astype(f32)

    logw = -jnp.exp(wf)                           # per-step log-decay, (R, A)

    # inclusive per-sequence cumulative log-decay via an O(T) log-step prefix
    # scan (replaces the old (T,T) f32 mask-matmul).
    # TODO(synk): for long T switch to a chunked scan carrying an (H,N,N) state
    # with a renormalised running log-decay (bounds VMEM on v7x, avoids exp overflow).
    clw_parts = []
    for b in range(Bg):
        acc = logw[b * Tq:(b + 1) * Tq, :]        # (T, A)
        d = 1
        while d < Tq:
            acc = acc + jnp.concatenate(
                [jnp.zeros((d, A), f32), acc[:Tq - d, :]], axis=0)
            d *= 2
        clw_parts.append(acc)
    clw = clw_parts[0] if Bg == 1 else jnp.concatenate(clw_parts, axis=0)
    lex = clw - logw                              # exclusive prefix

    q = rf * jnp.exp(lex)                         # decayed receptance
    kk = kf * jnp.exp(-clw)                       # inverse-decayed key
    prod = rf * u * kf                            # diagonal (current-step) term

    row = lax.broadcasted_iota(jnp.int32, (Tq, Tq), 0)
    col = lax.broadcasted_iota(jnp.int32, (Tq, Tq), 1)
    causal = col < row                            # strictly lower triangular

    # per (batch, head) scores + GroupNorm stats; then one full-width gate and
    # ONE (R, A) @ (A, C) output matmul (no serialised per-head accumulation).
    yn_rows = []
    for b in range(Bg):
        rsl = slice(b * Tq, (b + 1) * Tq)
        yn_heads = []
        for h in range(H):
            csl = slice(h * N, (h + 1) * N)
            qbh, kbh, vbh = q[rsl, csl], kk[rsl, csl], vf[rsl, csl]
            sc = jnp.einsum("tj,sj->ts", qbh, kbh,
                            precision=HI, preferred_element_type=f32)    # (T, T)
            sc = jnp.where(causal, sc, 0.0)
            diag = jnp.sum(prod[rsl, csl], axis=-1, keepdims=True)       # (T, 1)
            ybh = jnp.dot(sc, vbh, precision=HI,
                          preferred_element_type=f32) + diag * vbh
            ybh = ybh.astype(bf16).astype(f32)    # CUDA op returns bf16
            mu = jnp.mean(ybh, axis=-1, keepdims=True)
            var = jnp.mean(jnp.square(ybh - mu), axis=-1, keepdims=True)
            yn_heads.append((ybh - mu) * lax.rsqrt(var + LN_EPS))
        yn_rows.append(yn_heads[0] if H == 1
                       else jnp.concatenate(yn_heads, axis=1))
    yn = yn_rows[0] if Bg == 1 else jnp.concatenate(yn_rows, axis=0)     # (R, A)

    gated = (yn * gamma + beta) * g               # GroupNorm affine + SiLU gate
    out2 = bdot(gated, wo_ref[...])               # single (R, A) @ (A, C) matmul

    # lane-dense (1, T*C) output rows -> unmasked stores / dense writeback DMA
    for b in range(Bg):
        o_ref[b] = jnp.concatenate(
            [out2[b * Tq + t:b * Tq + t + 1, :] for t in range(Tq)], axis=1)


# ---------------------------- parameters -------------------------------------
def init_params(key):
    C = N_EMBD
    ratio_0_to_1 = LAYER_ID / (N_LAYER - 1)
    ratio_1_to_almost0 = 1.0 - LAYER_ID / N_LAYER
    ddd = jnp.arange(C, dtype=jnp.float32) / C
    p = {}
    p["time_maa_x"] = (1.0 - ddd ** ratio_1_to_almost0).reshape(1, 1, C)
    p["time_maa_w"] = (1.0 - ddd ** ratio_1_to_almost0).reshape(1, 1, C)
    p["time_maa_k"] = (1.0 - ddd ** ratio_1_to_almost0).reshape(1, 1, C)
    p["time_maa_v"] = (1.0 - (ddd ** ratio_1_to_almost0 + 0.3 * ratio_0_to_1)).reshape(1, 1, C)
    p["time_maa_r"] = (1.0 - ddd ** (0.5 * ratio_1_to_almost0)).reshape(1, 1, C)
    p["time_maa_g"] = (1.0 - ddd ** (0.5 * ratio_1_to_almost0)).reshape(1, 1, C)

    keys = jax.random.split(key, 10)
    # original init is zeros for *_w1; use tiny deterministic random so the
    # LoRA path is actually exercised (shapes identical to the module's).
    p["time_maa_w1"] = jax.random.uniform(keys[0], (C, 5 * D_MIX_LORA), jnp.float32, -0.01, 0.01)
    p["time_maa_w2"] = jax.random.uniform(keys[1], (5, D_MIX_LORA, C), jnp.float32, -0.01, 0.01)

    n = jnp.arange(DIM_ATT, dtype=jnp.float32)
    p["time_decay"] = (-6.0 + 5.0 * (n / (DIM_ATT - 1)) ** (0.7 + 1.3 * ratio_0_to_1)
                       ).reshape(1, 1, DIM_ATT)
    p["time_decay_w1"] = jax.random.uniform(keys[2], (C, D_DECAY_LORA), jnp.float32, -0.01, 0.01)
    p["time_decay_w2"] = jax.random.uniform(keys[3], (D_DECAY_LORA, DIM_ATT), jnp.float32, -0.01, 0.01)

    zigzag = (((jnp.arange(DIM_ATT, dtype=jnp.int32) + 1) % 3) - 1).astype(jnp.float32) * 0.1
    p["time_faaaa"] = (ratio_0_to_1 * (1.0 - n / (DIM_ATT - 1)) + zigzag).reshape(N_HEAD, HEAD_SIZE)

    # nn.Linear computes x @ W.T ; store the (in, out) matrices directly.
    scale = 0.1
    p["W_r"] = jax.random.normal(keys[4], (C, DIM_ATT), jnp.float32) * scale
    p["W_k"] = jax.random.normal(keys[5], (C, DIM_ATT), jnp.float32) * scale
    p["W_v"] = jax.random.normal(keys[6], (C, DIM_ATT), jnp.float32) * scale
    p["W_g"] = jax.random.normal(keys[7], (C, DIM_ATT), jnp.float32) * scale
    p["W_o"] = jax.random.normal(keys[8], (DIM_ATT, C), jnp.float32) * scale
    p["ln_x_gamma"] = jnp.ones((DIM_ATT,), jnp.float32)    # GroupNorm defaults
    p["ln_x_beta"] = jnp.zeros((DIM_ATT,), jnp.float32)
    return p


# ---------------------------- forward (Pallas) --------------------------------
def _num_grid_steps(batch: int) -> int:
    # v7x has 2 TensorCores per chip -> a 2-way "parallel" grid uses both;
    # v5e / v6e have a single TC, where extra grid steps are pure overhead.
    try:
        kind = jax.devices()[0].device_kind.lower()
    except Exception:
        kind = ""
    if ("v7" in kind or "7x" in kind) and batch >= 2 and batch % 2 == 0:
        return 2
    return 1


def rwkv_tmix_x060_forward(p, x):
    Bq, Tq, C = x.shape
    A = DIM_ATT
    bf16 = jnp.bfloat16
    assert C == A, "packed small-param slab assumes n_embd == dim_att"

    # packed f32 small params: [maa_x, maa_w, maa_k, maa_v, maa_r, maa_g,
    #                           time_decay, ln_gamma, ln_beta, time_faaaa(bf16-rounded)]
    smallp = jnp.concatenate([
        p["time_maa_x"].reshape(1, C), p["time_maa_w"].reshape(1, C),
        p["time_maa_k"].reshape(1, C), p["time_maa_v"].reshape(1, C),
        p["time_maa_r"].reshape(1, C), p["time_maa_g"].reshape(1, C),
        p["time_decay"].reshape(1, A),
        p["ln_x_gamma"].reshape(1, A), p["ln_x_beta"].reshape(1, A),
        p["time_faaaa"].astype(bf16).astype(jnp.float32).reshape(1, A),
    ], axis=0)                                                # (10, C)

    w1 = p["time_maa_w1"].astype(bf16)                        # (C, 5*D_MIX)
    w2bd = jax.scipy.linalg.block_diag(
        *[p["time_maa_w2"][i] for i in range(5)]).astype(bf16)  # (5*D_MIX, 5*C)

    # block matrix fusing [decay-LoRA-1 | W_k | W_v | W_r | W_g] into one matmul:
    # rows are the 5 mixed streams [w|k|v|r|g], columns are [k|v|r|g|wpre].
    wblk = jnp.zeros((5 * C, 4 * A + D_DECAY_LORA), jnp.float32)
    wblk = wblk.at[0:C, 4 * A:].set(p["time_decay_w1"])
    wblk = wblk.at[C:2 * C, 0:A].set(p["W_k"])
    wblk = wblk.at[2 * C:3 * C, A:2 * A].set(p["W_v"])
    wblk = wblk.at[3 * C:4 * C, 2 * A:3 * A].set(p["W_r"])
    wblk = wblk.at[4 * C:5 * C, 3 * A:4 * A].set(p["W_g"])
    wblk = wblk.astype(bf16)

    dw2 = p["time_decay_w2"].astype(bf16)
    wo = p["W_o"].astype(bf16)

    grid_b = _num_grid_steps(Bq)
    Bg = Bq // grid_b

    def fullspec(shape):
        return pl.BlockSpec(shape, lambda b, _n=len(shape): (0,) * _n)

    out_flat = pl.pallas_call(
        _rwkv_tmix_fused_kernel,
        grid=(grid_b,),
        in_specs=[pl.BlockSpec((Bg, Tq, C), lambda b: (b, 0, 0)),
                  fullspec((10, C)),
                  fullspec((C, 5 * D_MIX_LORA)),
                  fullspec((5 * D_MIX_LORA, 5 * C)),
                  fullspec((5 * C, 4 * A + D_DECAY_LORA)),
                  fullspec((D_DECAY_LORA, A)),
                  fullspec((A, C))],
        out_specs=pl.BlockSpec((Bg, 1, Tq * C), lambda b: (b, 0, 0)),
        out_shape=jax.ShapeDtypeStruct((Bq, 1, Tq * C), jnp.float32),
        compiler_params=pltpu.CompilerParams(
            dimension_semantics=("parallel",)),
    )(x, smallp, w1, w2bd, wblk, dw2, wo)
    return out_flat.reshape(Bq, Tq, C)


# ---------------------------- pure-JAX reference ------------------------------
def _wkv6_reference(r, k, v, w, u):
    # sequential scan matching the CUDA kernel step-by-step (f32 internal)
    Bq, H, Tq, N = r.shape
    r, k, v, w = (a.astype(jnp.float32) for a in (r, k, v, w))
    u = u.astype(jnp.float32)
    decay = jnp.exp(-jnp.exp(w))

    def step(state, inp):                         # state: (B, H, Ni, Nj)
        rt, kt, vt, dt = inp                      # each (B, H, N)
        yt = jnp.sum(state * rt[:, :, None, :], axis=-1) \
            + jnp.sum(rt * u[None] * kt, axis=-1, keepdims=True) * vt
        state = state * dt[:, :, None, :] + vt[..., :, None] * kt[..., None, :]
        return state, yt

    state0 = jnp.zeros((Bq, H, N, N), jnp.float32)
    xs = (r.transpose(2, 0, 1, 3), k.transpose(2, 0, 1, 3),
          v.transpose(2, 0, 1, 3), decay.transpose(2, 0, 1, 3))
    _, ys = lax.scan(step, state0, xs)
    return ys.transpose(1, 2, 0, 3)               # (B, H, T, N)


def reference_forward(p, x):
    bf = jnp.bfloat16
    f32 = jnp.float32

    def bdot(a, b):                               # same bf16-GEMM policy as kernel
        return jnp.dot(a.astype(bf), b.astype(bf), preferred_element_type=f32)

    Bq, Tq, C = x.shape
    H, N, A = N_HEAD, HEAD_SIZE, DIM_ATT
    BT = Bq * Tq
    x_shift = jnp.pad(x, ((0, 0), (1, 0), (0, 0)))[:, :-1, :]
    xx = x_shift - x
    xxx = (x + xx * p["time_maa_x"]).reshape(BT, C)
    mix = jnp.tanh(bdot(xxx, p["time_maa_w1"])).reshape(BT, 5, D_MIX_LORA).transpose(1, 0, 2)
    m = jnp.stack([bdot(mix[i], p["time_maa_w2"][i]) for i in range(5)], 0)
    m = m.reshape(5, Bq, Tq, C)
    mw, mk, mv, mr, mg = m[0], m[1], m[2], m[3], m[4]
    xw = x + xx * (p["time_maa_w"] + mw)
    xk = x + xx * (p["time_maa_k"] + mk)
    xv = x + xx * (p["time_maa_v"] + mv)
    xr = x + xx * (p["time_maa_r"] + mr)
    xg = x + xx * (p["time_maa_g"] + mg)
    r = bdot(xr.reshape(BT, C), p["W_r"])
    k = bdot(xk.reshape(BT, C), p["W_k"])
    v = bdot(xv.reshape(BT, C), p["W_v"])
    glin = bdot(xg.reshape(BT, C), p["W_g"])
    g = glin * (1.0 / (1.0 + jnp.exp(-glin)))
    ww = bdot(jnp.tanh(bdot(xw.reshape(BT, C), p["time_decay_w1"])), p["time_decay_w2"])
    w = p["time_decay"] + ww.reshape(Bq, Tq, A)

    to_bhtn = lambda t: t.reshape(Bq, Tq, H, N).transpose(0, 2, 1, 3).astype(bf)
    y = _wkv6_reference(to_bhtn(r.reshape(Bq, Tq, A)), to_bhtn(k.reshape(Bq, Tq, A)),
                        to_bhtn(v.reshape(Bq, Tq, A)), to_bhtn(w),
                        p["time_faaaa"].astype(bf))
    y = y.astype(bf).astype(f32)                  # CUDA op outputs bf16
    y = y.transpose(0, 2, 1, 3).reshape(BT, A)

    y3 = y.reshape(BT, H, N)
    mean = jnp.mean(y3, -1, keepdims=True)
    var = jnp.mean(jnp.square(y3 - mean), -1, keepdims=True)
    xn = (y3 - mean) * lax.rsqrt(var + LN_EPS)
    xn = xn * p["ln_x_gamma"].reshape(1, H, N) + p["ln_x_beta"].reshape(1, H, N)
    out = bdot((xn * g.reshape(BT, H, N)).reshape(BT, A), p["W_o"])
    return out.reshape(Bq, Tq, C)


# ---------------------------------- main --------------------------------------
if __name__ == "__main__":
    key = jax.random.PRNGKey(0)
    pkey, xkey = jax.random.split(key)
    params = init_params(pkey)
    x = jax.random.normal(xkey, (B, T, N_EMBD), jnp.float32)

    fwd = jax.jit(rwkv_tmix_x060_forward)
    out = jax.block_until_ready(fwd(params, x))

    ref = jax.block_until_ready(reference_forward(params, x))
    assert out.shape == (B, T, N_EMBD)
    assert bool(jnp.all(jnp.isfinite(out)))
    max_err = float(jnp.max(jnp.abs(out - ref)))
    if max_err > 1e-2:
        raise AssertionError(f"mismatch vs pure-JAX reference: max abs err {max_err}")
    print("KERNEL_OK")
</pallas_src>

<mosaic_0001>
module attributes {stable_mosaic.version = 11 : i64} {
  func.func @_rwkv_tmix_fused_kernel(%arg0: i32, %arg1: memref<2x8x32xf32, #tpu.memory_space<vmem>>, %arg2: memref<10x32xf32, #tpu.memory_space<vmem>>, %arg3: memref<32x40xbf16, #tpu.memory_space<vmem>>, %arg4: memref<40x160xbf16, #tpu.memory_space<vmem>>, %arg5: memref<160x144xbf16, #tpu.memory_space<vmem>>, %arg6: memref<16x32xbf16, #tpu.memory_space<vmem>>, %arg7: memref<32x32xbf16, #tpu.memory_space<vmem>>, %arg8: memref<2x1x256xf32, #tpu.memory_space<vmem>>) attributes {dimension_semantics = [#tpu.dimension_semantics<parallel>], iteration_bounds = array<i64: 1>, scalar_prefetch = 0 : i64, scratch_operands = 0 : i64, tpu.core_type = #tpu.core_type<tc>, window_params = [{transform_indices = @transform_0, window_bounds = array<i64: 2, 8, 32>}, {pipeline_mode = #tpu.pipeline_mode<synchronous>, transform_indices = @transform_1, window_bounds = array<i64: 10, 32>}, {pipeline_mode = #tpu.pipeline_mode<synchronous>, transform_indices = @transform_2, window_bounds = array<i64: 32, 40>}, {pipeline_mode = #tpu.pipeline_mode<synchronous>, transform_indices = @transform_3, window_bounds = array<i64: 40, 160>}, {pipeline_mode = #tpu.pipeline_mode<synchronous>, transform_indices = @transform_4, window_bounds = array<i64: 160, 144>}, {pipeline_mode = #tpu.pipeline_mode<synchronous>, transform_indices = @transform_5, window_bounds = array<i64: 16, 32>}, {pipeline_mode = #tpu.pipeline_mode<synchronous>, transform_indices = @transform_6, window_bounds = array<i64: 32, 32>}, {transform_indices = @transform_7, window_bounds = array<i64: 2, 1, 256>}]} {
    %c0 = arith.constant 0 : index
    %c0_0 = arith.constant 0 : index
    %0 = vector.load %arg2[%c0, %c0_0] : memref<10x32xf32, #tpu.memory_space<vmem>>, vector<10x32xf32>
    %1 = vector.extract_strided_slice %0 {offsets = [0, 0], sizes = [1, 32], strides = [1, 1]} : vector<10x32xf32> to vector<1x32xf32>
    %2 = vector.extract_strided_slice %0 {offsets = [6, 0], sizes = [1, 32], strides = [1, 1]} : vector<10x32xf32> to vector<1x32xf32>
    %3 = vector.extract_strided_slice %0 {offsets = [7, 0], sizes = [1, 32], strides = [1, 1]} : vector<10x32xf32> to vector<1x32xf32>
    %4 = vector.extract_strided_slice %0 {offsets = [8, 0], sizes = [1, 32], strides = [1, 1]} : vector<10x32xf32> to vector<1x32xf32>
    %5 = vector.extract_strided_slice %0 {offsets = [9, 0], sizes = [1, 32], strides = [1, 1]} : vector<10x32xf32> to vector<1x32xf32>
    %c0_1 = arith.constant 0 : index
    %c0_2 = arith.constant 0 : index
    %c0_3 = arith.constant 0 : index
    %6 = vector.load %arg1[%c0_1, %c0_2, %c0_3] : memref<2x8x32xf32, #tpu.memory_space<vmem>>, vector<1x8x32xf32>
    %7 = vector.shape_cast %6 : vector<1x8x32xf32> to vector<8x32xf32>
    %cst = arith.constant 0.000000e+00 : f32
    %8 = vector.broadcast %cst : f32 to vector<1x32xf32>
    %9 = vector.extract_strided_slice %7 {offsets = [0, 0], sizes = [7, 32], strides = [1, 1]} : vector<8x32xf32> to vector<7x32xf32>
    %10 = tpu.concatenate %8, %9 in 0 : vector<1x32xf32>, vector<7x32xf32> -> vector<8x32xf32>
    %11 = arith.subf %10, %7 : vector<8x32xf32>
    %c1 = arith.constant 1 : index
    %c0_4 = arith.constant 0 : index
    %c0_5 = arith.constant 0 : index
    %12 = vector.load %arg1[%c1, %c0_4, %c0_5] : memref<2x8x32xf32, #tpu.memory_space<vmem>>, vector<1x8x32xf32>
    %13 = vector.shape_cast %12 : vector<1x8x32xf32> to vector<8x32xf32>
    %cst_6 = arith.constant 0.000000e+00 : f32
    %14 = vector.broadcast %cst_6 : f32 to vector<1x32xf32>
    %15 = vector.extract_strided_slice %13 {offsets = [0, 0], sizes = [7, 32], strides = [1, 1]} : vector<8x32xf32> to vector<7x32xf32>
    %16 = tpu.concatenate %14, %15 in 0 : vector<1x32xf32>, vector<7x32xf32> -> vector<8x32xf32>
    %17 = arith.subf %16, %13 : vector<8x32xf32>
    %18 = tpu.concatenate %7, %13 in 0 : vector<8x32xf32>, vector<8x32xf32> -> vector<16x32xf32>
    %19 = tpu.concatenate %11, %17 in 0 : vector<8x32xf32>, vector<8x32xf32> -> vector<16x32xf32>
    %20 = vector.broadcast %1 : vector<1x32xf32> to vector<16x32xf32>
    %21 = arith.mulf %19, %20 : vector<16x32xf32>
    %22 = arith.addf %18, %21 : vector<16x32xf32>
    %c0_7 = arith.constant 0 : index
    %c0_8 = arith.constant 0 : index
    %23 = vector.load %arg3[%c0_7, %c0_8] : memref<32x40xbf16, #tpu.memory_space<vmem>>, vector<32x40xbf16>
    %24 = arith.truncf %22 : vector<16x32xf32> to vector<16x32xbf16>
    %cst_9 = arith.constant dense<0.000000e+00> : vector<16x40xf32>
    %25 = tpu.matmul %24, %23, %cst_9 {dimension_numbers = #tpu.dot_dimension_numbers<[1], [0], [0], [1], [0, 0, 1, 1], [], []>} : vector<16x32xbf16>, vector<32x40xbf16>, vector<16x40xf32> -> vector<16x40xf32>
    %26 = math.tanh %25 : vector<16x40xf32>
    %c0_10 = arith.constant 0 : index
    %c0_11 = arith.constant 0 : index
    %27 = vector.load %arg4[%c0_10, %c0_11] : memref<40x160xbf16, #tpu.memory_space<vmem>>, vector<40x160xbf16>
    %28 = arith.truncf %26 : vector<16x40xf32> to vector<16x40xbf16>
    %cst_12 = arith.constant dense<0.000000e+00> : vector<16x160xf32>
    %29 = tpu.matmul %28, %27, %cst_12 {dimension_numbers = #tpu.dot_dimension_numbers<[1], [0], [0], [1], [0, 0, 1, 1], [], []>} : vector<16x40xbf16>, vector<40x160xbf16>, vector<16x160xf32> -> vector<16x160xf32>
    %30 = vector.extract_strided_slice %0 {offsets = [1, 0], sizes = [1, 32], strides = [1, 1]} : vector<10x32xf32> to vector<1x32xf32>
    %31 = vector.extract_strided_slice %29 {offsets = [0, 0], sizes = [16, 32], strides = [1, 1]} : vector<16x160xf32> to vector<16x32xf32>
    %32 = vector.broadcast %30 : vector<1x32xf32> to vector<16x32xf32>
    %33 = arith.addf %32, %31 : vector<16x32xf32>
    %34 = arith.mulf %19, %33 : vector<16x32xf32>
    %35 = arith.addf %18, %34 : vector<16x32xf32>
    %36 = vector.extract_strided_slice %0 {offsets = [2, 0], sizes = [1, 32], strides = [1, 1]} : vector<10x32xf32> to vector<1x32xf32>
    %37 = vector.extract_strided_slice %29 {offsets = [0, 32], sizes = [16, 32], strides = [1, 1]} : vector<16x160xf32> to vector<16x32xf32>
    %38 = vector.broadcast %36 : vector<1x32xf32> to vector<16x32xf32>
    %39 = arith.addf %38, %37 : vector<16x32xf32>
    %40 = arith.mulf %19, %39 : vector<16x32xf32>
    %41 = arith.addf %18, %40 : vector<16x32xf32>
    %42 = vector.extract_strided_slice %0 {offsets = [3, 0], sizes = [1, 32], strides = [1, 1]} : vector<10x32xf32> to vector<1x32xf32>
    %43 = vector.extract_strided_slice %29 {offsets = [0, 64], sizes = [16, 32], strides = [1, 1]} : vector<16x160xf32> to vector<16x32xf32>
    %44 = vector.broadcast %42 : vector<1x32xf32> to vector<16x32xf32>
    %45 = arith.addf %44, %43 : vector<16x32xf32>
    %46 = arith.mulf %19, %45 : vector<16x32xf32>
    %47 = arith.addf %18, %46 : vector<16x32xf32>
    %48 = vector.extract_strided_slice %0 {offsets = [4, 0], sizes = [1, 32], strides = [1, 1]} : vector<10x32xf32> to vector<1x32xf32>
    %49 = vector.extract_strided_slice %29 {offsets = [0, 96], sizes = [16, 32], strides = [1, 1]} : vector<16x160xf32> to vector<16x32xf32>
    %50 = vector.broadcast %48 : vector<1x32xf32> to vector<16x32xf32>
    %51 = arith.addf %50, %49 : vector<16x32xf32>
    %52 = arith.mulf %19, %51 : vector<16x32xf32>
    %53 = arith.addf %18, %52 : vector<16x32xf32>
    %54 = vector.extract_strided_slice %0 {offsets = [5, 0], sizes = [1, 32], strides = [1, 1]} : vector<10x32xf32> to vector<1x32xf32>
    %55 = vector.extract_strided_slice %29 {offsets = [0, 128], sizes = [16, 32], strides = [1, 1]} : vector<16x160xf32> to vector<16x32xf32>
    %56 = vector.broadcast %54 : vector<1x32xf32> to vector<16x32xf32>
    %57 = arith.addf %56, %55 : vector<16x32xf32>
    %58 = arith.mulf %19, %57 : vector<16x32xf32>
    %59 = arith.addf %18, %58 : vector<16x32xf32>
    %60 = tpu.concatenate %35, %41, %47, %53, %59 in 1 : vector<16x32xf32>, vector<16x32xf32>, vector<16x32xf32>, vector<16x32xf32>, vector<16x32xf32> -> vector<16x160xf32>
    %c0_13 = arith.constant 0 : index
    %c0_14 = arith.constant 0 : index
    %61 = vector.load %arg5[%c0_13, %c0_14] : memref<160x144xbf16, #tpu.memory_space<vmem>>, vector<160x144xbf16>
    %62 = arith.truncf %60 : vector<16x160xf32> to vector<16x160xbf16>
    %cst_15 = arith.constant dense<0.000000e+00> : vector<16x144xf32>
    %63 = tpu.matmul %62, %61, %cst_15 {dimension_numbers = #tpu.dot_dimension_numbers<[1], [0], [0], [1], [0, 0, 1, 1], [], []>} : vector<16x160xbf16>, vector<160x144xbf16>, vector<16x144xf32> -> vector<16x144xf32>
    %64 = vector.extract_strided_slice %63 {offsets = [0, 0], sizes = [16, 32], strides = [1, 1]} : vector<16x144xf32> to vector<16x32xf32>
    %65 = vector.extract_strided_slice %63 {offsets = [0, 32], sizes = [16, 32], strides = [1, 1]} : vector<16x144xf32> to vector<16x32xf32>
    %66 = vector.extract_strided_slice %63 {offsets = [0, 64], sizes = [16, 32], strides = [1, 1]} : vector<16x144xf32> to vector<16x32xf32>
    %67 = vector.extract_strided_slice %63 {offsets = [0, 96], sizes = [16, 32], strides = [1, 1]} : vector<16x144xf32> to vector<16x32xf32>
    %68 = vector.extract_strided_slice %63 {offsets = [0, 128], sizes = [16, 16], strides = [1, 1]} : vector<16x144xf32> to vector<16x16xf32>
    %cst_16 = arith.constant 0.000000e+00 : f32
    %69 = vector.broadcast %cst_16 : f32 to vector<16x32xf32>
    %70 = arith.subf %69, %67 : vector<16x32xf32>
    %71 = math.exp %70 : vector<16x32xf32>
    %cst_17 = arith.constant 1.000000e+00 : f32
    %72 = vector.broadcast %cst_17 : f32 to vector<16x32xf32>
    %73 = arith.addf %72, %71 : vector<16x32xf32>
    %74 = tpu.reciprocal %73 {approx = true} : vector<16x32xf32> -> vector<16x32xf32>
    %75 = arith.mulf %67, %74 : vector<16x32xf32>
    %76 = math.tanh %68 : vector<16x16xf32>
    %c0_18 = arith.constant 0 : index
    %c0_19 = arith.constant 0 : index
    %77 = vector.load %arg6[%c0_18, %c0_19] : memref<16x32xbf16, #tpu.memory_space<vmem>>, vector<16x32xbf16>
    %78 = arith.truncf %76 : vector<16x16xf32> to vector<16x16xbf16>
    %cst_20 = arith.constant dense<0.000000e+00> : vector<16x32xf32>
    %79 = tpu.matmul %78, %77, %cst_20 {dimension_numbers = #tpu.dot_dimension_numbers<[1], [0], [0], [1], [0, 0, 1, 1], [], []>} : vector<16x16xbf16>, vector<16x32xbf16>, vector<16x32xf32> -> vector<16x32xf32>
    %80 = vector.broadcast %2 : vector<1x32xf32> to vector<16x32xf32>
    %81 = arith.addf %80, %79 : vector<16x32xf32>
    %82 = arith.truncf %66 : vector<16x32xf32> to vector<16x32xbf16>
    %83 = arith.extf %82 : vector<16x32xbf16> to vector<16x32xf32>
    %84 = arith.truncf %64 : vector<16x32xf32> to vector<16x32xbf16>
    %85 = arith.extf %84 : vector<16x32xbf16> to vector<16x32xf32>
    %86 = arith.truncf %65 : vector<16x32xf32> to vector<16x32xbf16>
    %87 = arith.extf %86 : vector<16x32xbf16> to vector<16x32xf32>
    %88 = arith.truncf %81 : vector<16x32xf32> to vector<16x32xbf16>
    %89 = arith.extf %88 : vector<16x32xbf16> to vector<16x32xf32>
    %90 = math.exp %89 : vector<16x32xf32>
    %cst_21 = arith.constant 0.000000e+00 : f32
    %91 = vector.broadcast %cst_21 : f32 to vector<16x32xf32>
    %92 = arith.subf %91, %90 : vector<16x32xf32>
    %93 = vector.extract_strided_slice %92 {offsets = [0, 0], sizes = [8, 32], strides = [1, 1]} : vector<16x32xf32> to vector<8x32xf32>
    %cst_22 = arith.constant 0.000000e+00 : f32
    %94 = vector.broadcast %cst_22 : f32 to vector<1x32xf32>
    %95 = vector.extract_strided_slice %93 {offsets = [0, 0], sizes = [7, 32], strides = [1, 1]} : vector<8x32xf32> to vector<7x32xf32>
    %96 = tpu.concatenate %94, %95 in 0 : vector<1x32xf32>, vector<7x32xf32> -> vector<8x32xf32>
    %97 = arith.addf %93, %96 : vector<8x32xf32>
    %cst_23 = arith.constant 0.000000e+00 : f32
    %98 = vector.broadcast %cst_23 : f32 to vector<2x32xf32>
    %99 = vector.extract_strided_slice %97 {offsets = [0, 0], sizes = [6, 32], strides = [1, 1]} : vector<8x32xf32> to vector<6x32xf32>
    %100 = tpu.concatenate %98, %99 in 0 : vector<2x32xf32>, vector<6x32xf32> -> vector<8x32xf32>
    %101 = arith.addf %97, %100 : vector<8x32xf32>
    %cst_24 = arith.constant 0.000000e+00 : f32
    %102 = vector.broadcast %cst_24 : f32 to vector<4x32xf32>
    %103 = vector.extract_strided_slice %101 {offsets = [0, 0], sizes = [4, 32], strides = [1, 1]} : vector<8x32xf32> to vector<4x32xf32>
    %104 = tpu.concatenate %102, %103 in 0 : vector<4x32xf32>, vector<4x32xf32> -> vector<8x32xf32>
    %105 = arith.addf %101, %104 : vector<8x32xf32>
    %106 = vector.extract_strided_slice %92 {offsets = [8, 0], sizes = [8, 32], strides = [1, 1]} : vector<16x32xf32> to vector<8x32xf32>
    %cst_25 = arith.constant 0.000000e+00 : f32
    %107 = vector.broadcast %cst_25 : f32 to vector<1x32xf32>
    %108 = vector.extract_strided_slice %106 {offsets = [0, 0], sizes = [7, 32], strides = [1, 1]} : vector<8x32xf32> to vector<7x32xf32>
    %109 = tpu.concatenate %107, %108 in 0 : vector<1x32xf32>, vector<7x32xf32> -> vector<8x32xf32>
    %110 = arith.addf %106, %109 : vector<8x32xf32>
    %cst_26 = arith.constant 0.000000e+00 : f32
    %111 = vector.broadcast %cst_26 : f32 to vector<2x32xf32>
    %112 = vector.extract_strided_slice %110 {offsets = [0, 0], sizes = [6, 32], strides = [1, 1]} : vector<8x32xf32> to vector<6x32xf32>
    %113 = tpu.concatenate %111, %112 in 0 : vector<2x32xf32>, vector<6x32xf32> -> vector<8x32xf32>
    %114 = arith.addf %110, %113 : vector<8x32xf32>
    %cst_27 = arith.constant 0.000000e+00 : f32
    %115 = vector.broadcast %cst_27 : f32 to vector<4x32xf32>
    %116 = vector.extract_strided_slice %114 {offsets = [0, 0], sizes = [4, 32], strides = [1, 1]} : vector<8x32xf32> to vector<4x32xf32>
    %117 = tpu.concatenate %115, %116 in 0 : vector<4x32xf32>, vector<4x32xf32> -> vector<8x32xf32>
    %118 = arith.addf %114, %117 : vector<8x32xf32>
    %119 = tpu.concatenate %105, %118 in 0 : vector<8x32xf32>, vector<8x32xf32> -> vector<16x32xf32>
    %120 = arith.subf %119, %92 : vector<16x32xf32>
    %121 = math.exp %120 : vector<16x32xf32>
    %122 = arith.mulf %83, %121 : vector<16x32xf32>
    %cst_28 = arith.constant 0.000000e+00 : f32
    %123 = vector.broadcast %cst_28 : f32 to vector<16x32xf32>
    %124 = arith.subf %123, %119 : vector<16x32xf32>
    %125 = math.exp %124 : vector<16x32xf32>
    %126 = arith.mulf %85, %125 : vector<16x32xf32>
    %127 = vector.broadcast %5 : vector<1x32xf32> to vector<16x32xf32>
    %128 = arith.mulf %83, %127 : vector<16x32xf32>
    %129 = arith.mulf %128, %85 : vector<16x32xf32>
    %130 = tpu.iota {dimensions = array<i32: 0>} : vector<8x8xi32>
    %131 = tpu.iota {dimensions = array<i32: 1>} : vector<8x8xi32>
    %132 = arith.cmpi slt, %131, %130 : vector<8x8xi32>
    %133 = vector.extract_strided_slice %122 {offsets = [0, 0], sizes = [8, 16], strides = [1, 1]} : vector<16x32xf32> to vector<8x16xf32>
    %134 = vector.extract_strided_slice %126 {offsets = [0, 0], sizes = [8, 16], strides = [1, 1]} : vector<16x32xf32> to vector<8x16xf32>
    %135 = vector.extract_strided_slice %87 {offsets = [0, 0], sizes = [8, 16], strides = [1, 1]} : vector<16x32xf32> to vector<8x16xf32>
    "tpu.trace_start"() <{level = 10 : i32, message = "tj,sj->ts"}> : () -> ()
    %cst_29 = arith.constant dense<0.000000e+00> : vector<8x8xf32>
    %136 = tpu.matmul %133, %134, %cst_29 {dimension_numbers = #tpu.dot_dimension_numbers<[1], [1], [0], [0], [0, 0, 1, 0], [], []>, precision = #tpu.contract_precision<fp32>} : vector<8x16xf32>, vector<8x16xf32>, vector<8x8xf32> -> vector<8x8xf32>
    %cst_30 = arith.constant 0.000000e+00 : f32
    "tpu.trace_stop"() : () -> ()
    %137 = vector.broadcast %cst_30 : f32 to vector<8x8xf32>
    %138 = arith.select %132, %136, %137 : vector<8x8xi1>, vector<8x8xf32>
    %139 = vector.extract_strided_slice %129 {offsets = [0, 0], sizes = [8, 16], strides = [1, 1]} : vector<16x32xf32> to vector<8x16xf32>
    %cst_31 = arith.constant dense<0.000000e+00> : vector<8xf32>
    %140 = vector.multi_reduction <add>, %139, %cst_31 [1] : vector<8x16xf32> to vector<8xf32>
    %141 = vector.shape_cast %140 : vector<8xf32> to vector<8x1xf32>
    %cst_32 = arith.constant dense<0.000000e+00> : vector<8x16xf32>
    %142 = tpu.matmul %138, %135, %cst_32 {dimension_numbers = #tpu.dot_dimension_numbers<[1], [0], [0], [1], [0, 0, 1, 1], [], []>, precision = #tpu.contract_precision<fp32>} : vector<8x8xf32>, vector<8x16xf32>, vector<8x16xf32> -> vector<8x16xf32>
    %143 = vector.broadcast %141 : vector<8x1xf32> to vector<8x16xf32>
    %144 = arith.mulf %143, %135 : vector<8x16xf32>
    %145 = arith.addf %142, %144 : vector<8x16xf32>
    %146 = arith.truncf %145 : vector<8x16xf32> to vector<8x16xbf16>
    %147 = arith.extf %146 : vector<8x16xbf16> to vector<8x16xf32>
    %cst_33 = arith.constant dense<0.000000e+00> : vector<8xf32>
    %148 = vector.multi_reduction <add>, %147, %cst_33 [1] : vector<8x16xf32> to vector<8xf32>
    %149 = vector.shape_cast %148 : vector<8xf32> to vector<8x1xf32>
    %cst_34 = arith.constant 1.600000e+01 : f32
    %150 = vector.broadcast %cst_34 : f32 to vector<8x1xf32>
    %151 = arith.divf %149, %150 : vector<8x1xf32>
    %152 = vector.broadcast %151 : vector<8x1xf32> to vector<8x16xf32>
    %153 = arith.subf %147, %152 : vector<8x16xf32>
    %154 = arith.mulf %153, %153 : vector<8x16xf32>
    %cst_35 = arith.constant dense<0.000000e+00> : vector<8xf32>
    %155 = vector.multi_reduction <add>, %154, %cst_35 [1] : vector<8x16xf32> to vector<8xf32>
    %156 = vector.shape_cast %155 : vector<8xf32> to vector<8x1xf32>
    %cst_36 = arith.constant 1.600000e+01 : f32
    %157 = vector.broadcast %cst_36 : f32 to vector<8x1xf32>
    %158 = arith.divf %156, %157 : vector<8x1xf32>
    %159 = vector.broadcast %151 : vector<8x1xf32> to vector<8x16xf32>
    %160 = arith.subf %147, %159 : vector<8x16xf32>
    %cst_37 = arith.constant 6.400000e-04 : f32
    %161 = vector.broadcast %cst_37 : f32 to vector<8x1xf32>
    %162 = arith.addf %158, %161 : vector<8x1xf32>
    %163 = math.rsqrt %162 : vector<8x1xf32>
    %164 = vector.broadcast %163 : vector<8x1xf32> to vector<8x16xf32>
    %165 = arith.mulf %160, %164 : vector<8x16xf32>
    %166 = vector.extract_strided_slice %122 {offsets = [0, 16], sizes = [8, 16], strides = [1, 1]} : vector<16x32xf32> to vector<8x16xf32>
    %167 = vector.extract_strided_slice %126 {offsets = [0, 16], sizes = [8, 16], strides = [1, 1]} : vector<16x32xf32> to vector<8x16xf32>
    %168 = vector.extract_strided_slice %87 {offsets = [0, 16], sizes = [8, 16], strides = [1, 1]} : vector<16x32xf32> to vector<8x16xf32>
    "tpu.trace_start"() <{level = 10 : i32, message = "tj,sj->ts"}> : () -> ()
    %cst_38 = arith.constant dense<0.000000e+00> : vector<8x8xf32>
    %169 = tpu.matmul %166, %167, %cst_38 {dimension_numbers = #tpu.dot_dimension_numbers<[1], [1], [0], [0], [0, 0, 1, 0], [], []>, precision = #tpu.contract_precision<fp32>} : vector<8x16xf32>, vector<8x16xf32>, vector<8x8xf32> -> vector<8x8xf32>
    %cst_39 = arith.constant 0.000000e+00 : f32
    "tpu.trace_stop"() : () -> ()
    %170 = vector.broadcast %cst_39 : f32 to vector<8x8xf32>
    %171 = arith.select %132, %169, %170 : vector<8x8xi1>, vector<8x8xf32>
    %172 = vector.extract_strided_slice %129 {offsets = [0, 16], sizes = [8, 16], strides = [1, 1]} : vector<16x32xf32> to vector<8x16xf32>
    %cst_40 = arith.constant dense<0.000000e+00> : vector<8xf32>
    %173 = vector.multi_reduction <add>, %172, %cst_40 [1] : vector<8x16xf32> to vector<8xf32>
    %174 = vector.shape_cast %173 : vector<8xf32> to vector<8x1xf32>
    %cst_41 = arith.constant dense<0.000000e+00> : vector<8x16xf32>
    %175 = tpu.matmul %171, %168, %cst_41 {dimension_numbers = #tpu.dot_dimension_numbers<[1], [0], [0], [1], [0, 0, 1, 1], [], []>, precision = #tpu.contract_precision<fp32>} : vector<8x8xf32>, vector<8x16xf32>, vector<8x16xf32> -> vector<8x16xf32>
    %176 = vector.broadcast %174 : vector<8x1xf32> to vector<8x16xf32>
    %177 = arith.mulf %176, %168 : vector<8x16xf32>
    %178 = arith.addf %175, %177 : vector<8x16xf32>
    %179 = arith.truncf %178 : vector<8x16xf32> to vector<8x16xbf16>
    %180 = arith.extf %179 : vector<8x16xbf16> to vector<8x16xf32>
    %cst_42 = arith.constant dense<0.000000e+00> : vector<8xf32>
    %181 = vector.multi_reduction <add>, %180, %cst_42 [1] : vector<8x16xf32> to vector<8xf32>
    %182 = vector.shape_cast %181 : vector<8xf32> to vector<8x1xf32>
    %cst_43 = arith.constant 1.600000e+01 : f32
    %183 = vector.broadcast %cst_43 : f32 to vector<8x1xf32>
    %184 = arith.divf %182, %183 : vector<8x1xf32>
    %185 = vector.broadcast %184 : vector<8x1xf32> to vector<8x16xf32>
    %186 = arith.subf %180, %185 : vector<8x16xf32>
    %187 = arith.mulf %186, %186 : vector<8x16xf32>
    %cst_44 = arith.constant dense<0.000000e+00> : vector<8xf32>
    %188 = vector.multi_reduction <add>, %187, %cst_44 [1] : vector<8x16xf32> to vector<8xf32>
    %189 = vector.shape_cast %188 : vector<8xf32> to vector<8x1xf32>
    %cst_45 = arith.constant 1.600000e+01 : f32
    %190 = vector.broadcast %cst_45 : f32 to vector<8x1xf32>
    %191 = arith.divf %189, %190 : vector<8x1xf32>
    %192 = vector.broadcast %184 : vector<8x1xf32> to vector<8x16xf32>
    %193 = arith.subf %180, %192 : vector<8x16xf32>
    %cst_46 = arith.constant 6.400000e-04 : f32
    %194 = vector.broadcast %cst_46 : f32 to vector<8x1xf32>
    %195 = arith.addf %191, %194 : vector<8x1xf32>
    %196 = math.rsqrt %195 : vector<8x1xf32>
    %197 = vector.broadcast %196 : vector<8x1xf32> to vector<8x16xf32>
    %198 = arith.mulf %193, %197 : vector<8x16xf32>
    %199 = tpu.concatenate %165, %198 in 1 : vector<8x16xf32>, vector<8x16xf32> -> vector<8x32xf32>
    %200 = vector.extract_strided_slice %122 {offsets = [8, 0], sizes = [8, 16], strides = [1, 1]} : vector<16x32xf32> to vector<8x16xf32>
    %201 = vector.extract_strided_slice %126 {offsets = [8, 0], sizes = [8, 16], strides = [1, 1]} : vector<16x32xf32> to vector<8x16xf32>
    %202 = vector.extract_strided_slice %87 {offsets = [8, 0], sizes = [8, 16], strides = [1, 1]} : vector<16x32xf32> to vector<8x16xf32>
    "tpu.trace_start"() <{level = 10 : i32, message = "tj,sj->ts"}> : () -> ()
    %cst_47 = arith.constant dense<0.000000e+00> : vector<8x8xf32>
    %203 = tpu.matmul %200, %201, %cst_47 {dimension_numbers = #tpu.dot_dimension_numbers<[1], [1], [0], [0], [0, 0, 1, 0], [], []>, precision = #tpu.contract_precision<fp32>} : vector<8x16xf32>, vector<8x16xf32>, vector<8x8xf32> -> vector<8x8xf32>
    %cst_48 = arith.constant 0.000000e+00 : f32
    "tpu.trace_stop"() : () -> ()
    %204 = vector.broadcast %cst_48 : f32 to vector<8x8xf32>
    %205 = arith.select %132, %203, %204 : vector<8x8xi1>, vector<8x8xf32>
    %206 = vector.extract_strided_slice %129 {offsets = [8, 0], sizes = [8, 16], strides = [1, 1]} : vector<16x32xf32> to vector<8x16xf32>
    %cst_49 = arith.constant dense<0.000000e+00> : vector<8xf32>
    %207 = vector.multi_reduction <add>, %206, %cst_49 [1] : vector<8x16xf32> to vector<8xf32>
    %208 = vector.shape_cast %207 : vector<8xf32> to vector<8x1xf32>
    %cst_50 = arith.constant dense<0.000000e+00> : vector<8x16xf32>
    %209 = tpu.matmul %205, %202, %cst_50 {dimension_numbers = #tpu.dot_dimension_numbers<[1], [0], [0], [1], [0, 0, 1, 1], [], []>, precision = #tpu.contract_precision<fp32>} : vector<8x8xf32>, vector<8x16xf32>, vector<8x16xf32> -> vector<8x16xf32>
    %210 = vector.broadcast %208 : vector<8x1xf32> to vector<8x16xf32>
    %211 = arith.mulf %210, %202 : vector<8x16xf32>
    %212 = arith.addf %209, %211 : vector<8x16xf32>
    %213 = arith.truncf %212 : vector<8x16xf32> to vector<8x16xbf16>
    %214 = arith.extf %213 : vector<8x16xbf16> to vector<8x16xf32>
    %cst_51 = arith.constant dense<0.000000e+00> : vector<8xf32>
    %215 = vector.multi_reduction <add>, %214, %cst_51 [1] : vector<8x16xf32> to vector<8xf32>
    %216 = vector.shape_cast %215 : vector<8xf32> to vector<8x1xf32>
    %cst_52 = arith.constant 1.600000e+01 : f32
    %217 = vector.broadcast %cst_52 : f32 to vector<8x1xf32>
    %218 = arith.divf %216, %217 : vector<8x1xf32>
    %219 = vector.broadcast %218 : vector<8x1xf32> to vector<8x16xf32>
    %220 = arith.subf %214, %219 : vector<8x16xf32>
    %221 = arith.mulf %220, %220 : vector<8x16xf32>
    %cst_53 = arith.constant dense<0.000000e+00> : vector<8xf32>
    %222 = vector.multi_reduction <add>, %221, %cst_53 [1] : vector<8x16xf32> to vector<8xf32>
    %223 = vector.shape_cast %222 : vector<8xf32> to vector<8x1xf32>
    %cst_54 = arith.constant 1.600000e+01 : f32
    %224 = vector.broadcast %cst_54 : f32 to vector<8x1xf32>
    %225 = arith.divf %223, %224 : vector<8x1xf32>
    %226 = vector.broadcast %218 : vector<8x1xf32> to vector<8x16xf32>
    %227 = arith.subf %214, %226 : vector<8x16xf32>
    %cst_55 = arith.constant 6.400000e-04 : f32
    %228 = vector.broadcast %cst_55 : f32 to vector<8x1xf32>
    %229 = arith.addf %225, %228 : vector<8x1xf32>
    %230 = math.rsqrt %229 : vector<8x1xf32>
    %231 = vector.broadcast %230 : vector<8x1xf32> to vector<8x16xf32>
    %232 = arith.mulf %227, %231 : vector<8x16xf32>
    %233 = vector.extract_strided_slice %122 {offsets = [8, 16], sizes = [8, 16], strides = [1, 1]} : vector<16x32xf32> to vector<8x16xf32>
    %234 = vector.extract_strided_slice %126 {offsets = [8, 16], sizes = [8, 16], strides = [1, 1]} : vector<16x32xf32> to vector<8x16xf32>
    %235 = vector.extract_strided_slice %87 {offsets = [8, 16], sizes = [8, 16], strides = [1, 1]} : vector<16x32xf32> to vector<8x16xf32>
    "tpu.trace_start"() <{level = 10 : i32, message = "tj,sj->ts"}> : () -> ()
    %cst_56 = arith.constant dense<0.000000e+00> : vector<8x8xf32>
    %236 = tpu.matmul %233, %234, %cst_56 {dimension_numbers = #tpu.dot_dimension_numbers<[1], [1], [0], [0], [0, 0, 1, 0], [], []>, precision = #tpu.contract_precision<fp32>} : vector<8x16xf32>, vector<8x16xf32>, vector<8x8xf32> -> vector<8x8xf32>
    %cst_57 = arith.constant 0.000000e+00 : f32
    "tpu.trace_stop"() : () -> ()
    %237 = vector.broadcast %cst_57 : f32 to vector<8x8xf32>
    %238 = arith.select %132, %236, %237 : vector<8x8xi1>, vector<8x8xf32>
    %239 = vector.extract_strided_slice %129 {offsets = [8, 16], sizes = [8, 16], strides = [1, 1]} : vector<16x32xf32> to vector<8x16xf32>
    %cst_58 = arith.constant dense<0.000000e+00> : vector<8xf32>
    %240 = vector.multi_reduction <add>, %239, %cst_58 [1] : vector<8x16xf32> to vector<8xf32>
    %241 = vector.shape_cast %240 : vector<8xf32> to vector<8x1xf32>
    %cst_59 = arith.constant dense<0.000000e+00> : vector<8x16xf32>
    %242 = tpu.matmul %238, %235, %cst_59 {dimension_numbers = #tpu.dot_dimension_numbers<[1], [0], [0], [1], [0, 0, 1, 1], [], []>, precision = #tpu.contract_precision<fp32>} : vector<8x8xf32>, vector<8x16xf32>, vector<8x16xf32> -> vector<8x16xf32>
    %243 = vector.broadcast %241 : vector<8x1xf32> to vector<8x16xf32>
    %244 = arith.mulf %243, %235 : vector<8x16xf32>
    %245 = arith.addf %242, %244 : vector<8x16xf32>
    %246 = arith.truncf %245 : vector<8x16xf32> to vector<8x16xbf16>
    %247 = arith.extf %246 : vector<8x16xbf16> to vector<8x16xf32>
    %cst_60 = arith.constant dense<0.000000e+00> : vector<8xf32>
    %248 = vector.multi_reduction <add>, %247, %cst_60 [1] : vector<8x16xf32> to vector<8xf32>
    %249 = vector.shape_cast %248 : vector<8xf32> to vector<8x1xf32>
    %cst_61 = arith.constant 1.600000e+01 : f32
    %250 = vector.broadcast %cst_61 : f32 to vector<8x1xf32>
    %251 = arith.divf %249, %250 : vector<8x1xf32>
    %252 = vector.broadcast %251 : vector<8x1xf32> to vector<8x16xf32>
    %253 = arith.subf %247, %252 : vector<8x16xf32>
    %254 = arith.mulf %253, %253 : vector<8x16xf32>
    %cst_62 = arith.constant dense<0.000000e+00> : vector<8xf32>
    %255 = vector.multi_reduction <add>, %254, %cst_62 [1] : vector<8x16xf32> to vector<8xf32>
    %256 = vector.shape_cast %255 : vector<8xf32> to vector<8x1xf32>
    %cst_63 = arith.constant 1.600000e+01 : f32
    %257 = vector.broadcast %cst_63 : f32 to vector<8x1xf32>
    %258 = arith.divf %256, %257 : vector<8x1xf32>
    %259 = vector.broadcast %251 : vector<8x1xf32> to vector<8x16xf32>
    %260 = arith.subf %247, %259 : vector<8x16xf32>
    %cst_64 = arith.constant 6.400000e-04 : f32
    %261 = vector.broadcast %cst_64 : f32 to vector<8x1xf32>
    %262 = arith.addf %258, %261 : vector<8x1xf32>
    %263 = math.rsqrt %262 : vector<8x1xf32>
    %264 = vector.broadcast %263 : vector<8x1xf32> to vector<8x16xf32>
    %265 = arith.mulf %260, %264 : vector<8x16xf32>
    %266 = tpu.concatenate %232, %265 in 1 : vector<8x16xf32>, vector<8x16xf32> -> vector<8x32xf32>
    %267 = tpu.concatenate %199, %266 in 0 : vector<8x32xf32>, vector<8x32xf32> -> vector<16x32xf32>
    %268 = vector.broadcast %3 : vector<1x32xf32> to vector<16x32xf32>
    %269 = arith.mulf %267, %268 : vector<16x32xf32>
    %270 = vector.broadcast %4 : vector<1x32xf32> to vector<16x32xf32>
    %271 = arith.addf %269, %270 : vector<16x32xf32>
    %272 = arith.mulf %271, %75 : vector<16x32xf32>
    %c0_65 = arith.constant 0 : index
    %c0_66 = arith.constant 0 : index
    %273 = vector.load %arg7[%c0_65, %c0_66] : memref<32x32xbf16, #tpu.memory_space<vmem>>, vector<32x32xbf16>
    %274 = arith.truncf %272 : vector<16x32xf32> to vector<16x32xbf16>
    %cst_67 = arith.constant dense<0.000000e+00> : vector<16x32xf32>
    %275 = tpu.matmul %274, %273, %cst_67 {dimension_numbers = #tpu.dot_dimension_numbers<[1], [0], [0], [1], [0, 0, 1, 1], [], []>} : vector<16x32xbf16>, vector<32x32xbf16>, vector<16x32xf32> -> vector<16x32xf32>
    %276 = vector.extract_strided_slice %275 {offsets = [0, 0], sizes = [1, 32], strides = [1, 1]} : vector<16x32xf32> to vector<1x32xf32>
    %277 = vector.extract_strided_slice %275 {offsets = [1, 0], sizes = [1, 32], strides = [1, 1]} : vector<16x32xf32> to vector<1x32xf32>
    %278 = vector.extract_strided_slice %275 {offsets = [2, 0], sizes = [1, 32], strides = [1, 1]} : vector<16x32xf32> to vector<1x32xf32>
    %279 = vector.extract_strided_slice %275 {offsets = [3, 0], sizes = [1, 32], strides = [1, 1]} : vector<16x32xf32> to vector<1x32xf32>
    %280 = vector.extract_strided_slice %275 {offsets = [4, 0], sizes = [1, 32], strides = [1, 1]} : vector<16x32xf32> to vector<1x32xf32>
    %281 = vector.extract_strided_slice %275 {offsets = [5, 0], sizes = [1, 32], strides = [1, 1]} : vector<16x32xf32> to vector<1x32xf32>
    %282 = vector.extract_strided_slice %275 {offsets = [6, 0], sizes = [1, 32], strides = [1, 1]} : vector<16x32xf32> to vector<1x32xf32>
    %283 = vector.extract_strided_slice %275 {offsets = [7, 0], sizes = [1, 32], strides = [1, 1]} : vector<16x32xf32> to vector<1x32xf32>
    %284 = tpu.concatenate %276, %277, %278, %279, %280, %281, %282, %283 in 1 : vector<1x32xf32>, vector<1x32xf32>, vector<1x32xf32>, vector<1x32xf32>, vector<1x32xf32>, vector<1x32xf32>, vector<1x32xf32>, vector<1x32xf32> -> vector<1x256xf32>
    %c0_68 = arith.constant 0 : index
    %c0_69 = arith.constant 0 : index
    %c0_70 = arith.constant 0 : index
    %285 = vector.load %arg8[%c0_68, %c0_69, %c0_70] : memref<2x1x256xf32, #tpu.memory_space<vmem>>, vector<1x1x256xf32>
    %286 = vector.shape_cast %285 : vector<1x1x256xf32> to vector<1x256xf32>
    %287 = vector.shape_cast %284 : vector<1x256xf32> to vector<1x1x256xf32>
    tpu.vector_store %arg8[%c0_68, %c0_69, %c0_70], %287 {strides = array<i32>} : memref<2x1x256xf32, #tpu.memory_space<vmem>>, vector<1x1x256xf32>,
    %288 = vector.extract_strided_slice %275 {offsets = [8, 0], sizes = [1, 32], strides = [1, 1]} : vector<16x32xf32> to vector<1x32xf32>
    %289 = vector.extract_strided_slice %275 {offsets = [9, 0], sizes = [1, 32], strides = [1, 1]} : vector<16x32xf32> to vector<1x32xf32>
    %290 = vector.extract_strided_slice %275 {offsets = [10, 0], sizes = [1, 32], strides = [1, 1]} : vector<16x32xf32> to vector<1x32xf32>
    %291 = vector.extract_strided_slice %275 {offsets = [11, 0], sizes = [1, 32], strides = [1, 1]} : vector<16x32xf32> to vector<1x32xf32>
    %292 = vector.extract_strided_slice %275 {offsets = [12, 0], sizes = [1, 32], strides = [1, 1]} : vector<16x32xf32> to vector<1x32xf32>
    %293 = vector.extract_strided_slice %275 {offsets = [13, 0], sizes = [1, 32], strides = [1, 1]} : vector<16x32xf32> to vector<1x32xf32>
    %294 = vector.extract_strided_slice %275 {offsets = [14, 0], sizes = [1, 32], strides = [1, 1]} : vector<16x32xf32> to vector<1x32xf32>
    %295 = vector.extract_strided_slice %275 {offsets = [15, 0], sizes = [1, 32], strides = [1, 1]} : vector<16x32xf32> to vector<1x32xf32>
    %296 = tpu.concatenate %288, %289, %290, %291, %292, %293, %294, %295 in 1 : vector<1x32xf32>, vector<1x32xf32>, vector<1x32xf32>, vector<1x32xf32>, vector<1x32xf32>, vector<1x32xf32>, vector<1x32xf32>, vector<1x32xf32> -> vector<1x256xf32>
    %c1_71 = arith.constant 1 : index
    %c0_72 = arith.constant 0 : index
    %c0_73 = arith.constant 0 : index
    %297 = vector.load %arg8[%c1_71, %c0_72, %c0_73] : memref<2x1x256xf32, #tpu.memory_space<vmem>>, vector<1x1x256xf32>
    %298 = vector.shape_cast %297 : vector<1x1x256xf32> to vector<1x256xf32>
    %299 = vector.shape_cast %296 : vector<1x256xf32> to vector<1x1x256xf32>
    tpu.vector_store %arg8[%c1_71, %c0_72, %c0_73], %299 {strides = array<i32>} : memref<2x1x256xf32, #tpu.memory_space<vmem>>, vector<1x1x256xf32>,
    return
  }
  func.func @transform_0(%arg0: i32) -> (i32, i32, i32) {
    %c0_i32 = arith.constant 0 : i32
    %c0_i32_0 = arith.constant 0 : i32
    %c0_i32_1 = arith.constant 0 : i32
    return %arg0, %c0_i32, %c0_i32_0 : i32, i32, i32
  }
  func.func @transform_1(%arg0: i32) -> (i32, i32) {
    %c0_i32 = arith.constant 0 : i32
    %c0_i32_0 = arith.constant 0 : i32
    %c0_i32_1 = arith.constant 0 : i32
    return %c0_i32, %c0_i32_0 : i32, i32
  }
  func.func @transform_2(%arg0: i32) -> (i32, i32) {
    %c0_i32 = arith.constant 0 : i32
    %c0_i32_0 = arith.constant 0 : i32
    %c0_i32_1 = arith.constant 0 : i32
    return %c0_i32, %c0_i32_0 : i32, i32
  }
  func.func @transform_3(%arg0: i32) -> (i32, i32) {
    %c0_i32 = arith.constant 0 : i32
    %c0_i32_0 = arith.constant 0 : i32
    %c0_i32_1 = arith.constant 0 : i32
    return %c0_i32, %c0_i32_0 : i32, i32
  }
  func.func @transform_4(%arg0: i32) -> (i32, i32) {
    %c0_i32 = arith.constant 0 : i32
    %c0_i32_0 = arith.constant 0 : i32
    %c0_i32_1 = arith.constant 0 : i32
    return %c0_i32, %c0_i32_0 : i32, i32
  }
  func.func @transform_5(%arg0: i32) -> (i32, i32) {
    %c0_i32 = arith.constant 0 : i32
    %c0_i32_0 = arith.constant 0 : i32
    %c0_i32_1 = arith.constant 0 : i32
    return %c0_i32, %c0_i32_0 : i32, i32
  }
  func.func @transform_6(%arg0: i32) -> (i32, i32) {
    %c0_i32 = arith.constant 0 : i32
    %c0_i32_0 = arith.constant 0 : i32
    %c0_i32_1 = arith.constant 0 : i32
    return %c0_i32, %c0_i32_0 : i32, i32
  }
  func.func @transform_7(%arg0: i32) -> (i32, i32, i32) {
    %c0_i32 = arith.constant 0 : i32
    %c0_i32_0 = arith.constant 0 : i32
    %c0_i32_1 = arith.constant 0 : i32
    return %arg0, %c0_i32, %c0_i32_0 : i32, i32, i32
  }
}

</mosaic_0001>

<bundles_post_ra>
// kernel: rwkv_tmix_x060_forward.1
= control target key start
LH: loop header
LB: loop body
LE: loop exit
PB: predicated region body
PF: predicated region fallthrough
CT: control target
= control target key end

     0   :  { %v43_v0 = vlaneseq  ;;  %v5177_v1 = vmov 0.0   ;;  %vm5178_vm0 = vmmov 0   ;;  %vm33_vm1 = vcmask 1040384   ;;  %s5181_s19 = smov 96   ;;  %s5182_s26 = smov 32   ;;  %s5809_s2 = inlined_call_operand.vmem [shape: bf16[32,40], index: 2, kind: input, shape index: {}]   ;;  %s5810_s0 = inlined_call_operand.vmem [shape: f32[2,8,32], index: 0, kind: input, shape index: {}]   ;;  %s5811_s1 = inlined_call_operand.vmem [shape: f32[10,32], index: 1, kind: input, shape index: {}]   ;;  %s5812_s3 = inlined_call_operand.vmem [shape: bf16[40,160], index: 3, kind: input, shape index: {}]   ;;  %s5813_s4 = inlined_call_operand.vmem [shape: bf16[160,144], index: 4, kind: input, shape index: {}]   ;;  %s5814_s5 = inlined_call_operand.vmem [shape: bf16[16,32], index: 5, kind: input, shape index: {}]   ;;  %s5815_s6 = inlined_call_operand.vmem [shape: bf16[32,32], index: 6, kind: input, shape index: {}]   ;;  %s5816_s7 = inlined_call_operand.vmem [shape: f32[2,1,256], index: 7, kind: output, shape index: {}]  }
   0x1   :  { %4721 = vmatprep.subr.bf16.mxu0 %v5177_v1  ;;  %v5097_v2 = vld [vmem:[%s5809_s2] sm:$0xff]   ;;  %4725 = vmatprep.mubr.msk.bf16.mxu0 %vm5178_vm0, %v5177_v1  ;;  %v5098_v3 = vld [vmem:[%s5809_s2 + $0x8] sm:$0xff]   ;;  %vm68_vm2 = vcmask 261120   ;;  %v5102_v23 = vld [vmem:[%s5812_s3 + $0x14] ss:$8 sps:$4 sm:$0xff]   ;;  %v5179_v25 = vmov 0  }
   0x2   :  { %v5238_v4 = vshrl.u32 %v43_v0, 7  ;;  %4722 = vmatpush3.bf16.msra.mxu0 %v5097_v2  ;;  %v5243_v5 = vld [vmem:[%s5811_s1] sm:$0xff]  ;;  %v5253_v7 = vld [vmem:[%s5810_s0 + $0x8] sm:$0xff]  ;;  %189 = vmatprep.mubr.bf16.mxu1 %v5179_v25  ;;  %v5104_v26 = vld [vmem:[%s5812_s3 + $0x10] ss:$8 sps:$4 sm:$0xff]   ;;  %vm150_vm3 = vcmask 1043456  }
   0x3   :  { %v5248_v6 = vld [vmem:[%s5810_s0] sm:$0xff]  ;;  %4723 = vmatprep.subr.bf16.mxu0 %v5177_v1  ;;  %v39_v9 = vrot.slane %v5253_v7, 7  ;;  %vm146_vm4 = vcmask 326656   ;;  %v5112_v49 = vld [vmem:[%s5813_s4 + $0x14] ss:$8 sps:$4 sm:$0xff]   ;;  %vm296_vm5 = vcmask 523264  }
   0x4   :  { %v31_v8 = vrot.slane %v5248_v6, 7  ;;  %v45_v10 = vsub.s32 0, %v5238_v4  ;;  %v5099_v21 = vld [vmem:[%s5812_s3 + $0x4] ss:$8 sps:$4 sm:$0xff]   ;;  %v5101_v22 = vld [vmem:[%s5812_s3] ss:$8 sps:$4 sm:$0xff]  }
   0x5   :  { %v41_v12 = vsel %vm33_vm1, 0.0, %v39_v9  ;;  %157 = vmatprep.subr.bf16.mxu1 %v5099_v21  ;;  %v119_v24 = vld [vmem:[%s5812_s3 + $0x20] sm:$0xff]  ;;  %v262_v37 = vsub.s32 5, %v5238_v4  ;;  %s5180_s3 = smov 64   ;;  %v5110_v53 = vld [vmem:[%s5813_s4 + $0x10] ss:$8 sps:$4 sm:$0xff]  }
   0x6   :  { %v34_v11 = vsel %vm33_vm1, 0.0, %v31_v8  ;;  %v46_v13 = vrot.slane %v5243_v5, %v45_v10  ;;  %4724 = vmatpush3.bf16.msra.mxu0 %v5098_v3  ;;  %v5268_v15 = vsub.f32 %v41_v12, %v5253_v7  ;;  %158 = vmatpush1.bf16.msra.mxu1 %v5101_v22  ;;  %v4587_v27 = vcombine.high %v119_v24, %v119_v24  ;;  %v5107_v47 = vld [vmem:[%s5813_s4] ss:$8 sps:$4 sm:$0xff]   ;;  %v5109_v48 = vld [vmem:[%s5813_s4 + $0x4] ss:$8 sps:$4 sm:$0xff]   ;;  %s5184_s14 = smov 48  }
   0x7   :  { %v5265_v14 = vsub.f32 %v34_v11, %v5248_v6  ;;  %159 = vmatprep.subr.bf16.mxu1 %v5102_v23  ;;  %v4586_v28 = vcombine.low %v119_v24, %v119_v24  ;;  %v263_v38 = vrot.slane %v5243_v5, %v262_v37  ;;  %427 = vmatprep.subr.bf16.mxu0 %v5109_v48  ;;  %v5115_v54 = vld [vmem:[%s5813_s4 + $0x24] ss:$8 sps:$4 sm:$0xff]   ;;  %v5113_v55 = vld [vmem:[%s5813_s4 + $0x20] ss:$8 sps:$4 sm:$0xff]   ;;  %v5118_v56 = vld [vmem:[%s5813_s4 + $0x34] ss:$8 sps:$4 sm:$0xff]  }
   0x8   :  { %v48_v17 = vmul.f32 %v46_v13, %v5268_v15  ;;  %v5116_v57 = vld [vmem:[%s5813_s4 + $0x30] ss:$8 sps:$4 sm:$0xff]   ;;  %v5121_v58 = vld [vmem:[%s5813_s4 + $0x44] ss:$8 sps:$4 sm:$0xff]   ;;  %v5119_v59 = vld [vmem:[%s5813_s4 + $0x40] ss:$8 sps:$4 sm:$0xff]  }
   0x9   :  { %v47_v16 = vmul.f32 %v46_v13, %v5265_v14  ;;  %v152_v29 = vsel %vm150_vm3, %v4586_v28, 0  ;;  %v5124_v60 = vld [vmem:[%s5813_s4 + $0x54] ss:$8 sps:$4 sm:$0xff]   ;;  %v5122_v61 = vld [vmem:[%s5813_s4 + $0x50] ss:$8 sps:$4 sm:$0xff]   ;;  %v230_v8 = vsub.s32 3, %v5238_v4 }
   0xa   :  { %v50_v19 = vadd.f32 %v5253_v7, %v48_v17  ;;  %160 = vmatpush1.bf16.msra.mxu1 %v5104_v26  ;;  %v5127_v62 = vld [vmem:[%s5813_s4 + $0x64] ss:$8 sps:$4 sm:$0xff]   ;;  %v5125_v63 = vld [vmem:[%s5813_s4 + $0x60] ss:$8 sps:$4 sm:$0xff]   ;;  %v5130_v2 = vld [vmem:[%s5813_s4 + $0x74] ss:$8 sps:$4 sm:$0xff]  }
   0xb   :  { %v49_v18 = vadd.f32 %v47_v16, %v5248_v6  ;;  %4588 = vmatprep.subr.msk.bf16.mxu1 %vm150_vm3, %v4587_v27  ;;  %v5128_v3 = vld [vmem:[%s5813_s4 + $0x70] ss:$8 sps:$4 sm:$0xff]   ;;  %v212_v9 = vsub.s32 2, %v5238_v4  ;;  %v231_v11 = vrot.slane %v5243_v5, %v230_v8  ;;  %v5133_v13 = vld [vmem:[%s5813_s4 + $0x84] ss:$8 sps:$4 sm:$0xff]   ;;  %v246_v21 = vsub.s32 4, %v5238_v4 }
   0xc   :  { %v5136_v22 = vld [vmem:[%s5813_s4 + $0x94] ss:$8 sps:$4 sm:$0xff]   ;;  %v5134_v27 = vld [vmem:[%s5813_s4 + $0x90] ss:$8 sps:$4 sm:$0xff]   ;;  %vm299_vm6 = vcmask 785408   ;;  %vm493_vm7 = vcmask 130048  }
   0xd   :  { %v55_v20 = vpack.c.bf16 %v50_v19, %v49_v18  ;;  %v213_v12 = vrot.slane %v5243_v5, %v212_v9  ;;  %v5131_v18 = vld [vmem:[%s5813_s4 + $0x80] ss:$8 sps:$4 sm:$0xff]   ;;  %vm564_vm8 = vcmask 1041408   ;;  %s5185_s17 = smov 80   ;;  %vm1106_vm10 = vcmask 64512   ;;  %s5186_s18 = smov 16  }
   0xe   :  { %162 = vmatpush1.bf16.msra.mxu1 %v152_v29  ;;  %vm5789_vm11 = vcmp.lt.s32.totalorder %v43_v0, 256 }
   0xf   :  { %4726 = vmatmul.mubr.msk.bf16.vlgmr.msra.gmra.mrb[0].mxu0 %vm68_vm2, %v55_v20  ;;  %4729 = vmatprep.subr.bf16.mxu1 %v5177_v1 }
  0x10   :  { %428 = vmatpush1.bf16.msra.mxu0 %v5107_v47 }
  0x11   :  { %429 = vmatprep.subr.bf16.mxu0 %v5112_v49 }
  0x14   :  { %430 = vmatpush1.bf16.msra.mxu0 %v5110_v53 }
  0x15   :  { %431 = vmatprep.subr.bf16.mxu0 %v5115_v54 }
  0x18   :  { %432 = vmatpush1.bf16.msra.mxu0 %v5113_v55 }
  0x19   :  { %433 = vmatprep.subr.bf16.mxu0 %v5118_v56 }
  0x1c   :  { %434 = vmatpush1.bf16.msra.mxu0 %v5116_v57 }
  0x1d   :  { %435 = vmatprep.subr.bf16.mxu0 %v5121_v58 }
  0x20   :  { %436 = vmatpush1.bf16.msra.mxu0 %v5119_v59 }
  0x21   :  { %437 = vmatprep.subr.bf16.mxu0 %v5124_v60 }
  0x24   :  { %438 = vmatpush1.bf16.msra.mxu0 %v5122_v61 }
  0x25   :  { %439 = vmatprep.subr.bf16.mxu0 %v5127_v62 }
  0x28   :  { %440 = vmatpush1.bf16.msra.mxu0 %v5125_v63 }
  0x29   :  { %441 = vmatprep.subr.bf16.mxu0 %v5130_v2 }
  0x2c   :  { %442 = vmatpush1.bf16.msra.mxu0 %v5128_v3 }
  0x2d   :  { %443 = vmatprep.subr.bf16.mxu0 %v5133_v13 }
  0x30   :  { %444 = vmatpush1.bf16.msra.mxu0 %v5131_v18 }
  0x31   :  { %445 = vmatprep.subr.bf16.mxu0 %v5136_v22  ;;  %v540_v22 = vsub.s32 6, %v5238_v4 }
  0x34   :  { %446 = vmatpush1.bf16.msra.mxu0 %v5134_v27 }
  0x35   :  { %4735 = vmatprep.subr.mxu0 %v5177_v1 }
  0xe2   :  { %v106_v30 = vpop.f32.mrb[0].mxu0 }
  0xe3   :  { %v4727_v31 = vpop.f32.mrb[1].mxu0  ;;  %5140 = vtanh.f32 %v106_v30  ;;  %v247_v30 = vrot.slane %v5243_v5, %v246_v21 }
  0xe4   :  { %v109_v32 = vpop.f32.mrb[2].mxu0 }
  0xe5   :  { %5142 = vtanh.f32 %v109_v32  ;;  %v4728_v33 = vpop.f32.mrb[3].mxu0 }
  0xed   :  { %v5141_v34 = vpop.eup %5140 }
  0xef   :  { %v5143_v35 = vpop.eup %5142 }
  0xf0   :  { %v120_v36 = vpack.c.bf16 %v5143_v35, %v5141_v34 }
  0xf2   :  { %4589 = vmatmul.mubr.msk.bf16.vlgmr.msra.gmra.mrb[0].mxu1 %vm146_vm4, %v120_v36 }
  0xf3   :  { %4731 = vmatprep.mubr.msk.bf16.mxu1 %vm5178_vm0, %v5177_v1 }
 0x1c5   :  { %v5297_v39 = vpop.f32.mrb[0].mxu1 }
 0x1c6   :  { %232 = vrot.lane.b32.xlu1 %v5297_v39, %s5180_s3  ;;  %216 = vrot.lane.b32.xlu0 %v5297_v39, %s5181_s19  ;;  %v193_v40 = vpop.f32.mrb[1].mxu1 }
 0x1c7   :  { %v264_v41 = vadd.f32 %v263_v38, %v193_v40  ;;  %v5303_v42 = vpop.f32.mrb[2].mxu1 }
 0x1c8   :  { %v197_v43 = vpop.f32.mrb[3].mxu1 }
 0x1c9   :  { %v266_v44 = vmul.f32 %v264_v41, %v5265_v14  ;;  %v265_v45 = vadd.f32 %v263_v38, %v197_v43 }
 0x1ca   :  { %234 = vrot.lane.b32.xlu1 %v5303_v42, %s5180_s3  ;;  %218 = vrot.lane.b32.xlu0 %v5303_v42, %s5181_s19 }
 0x1cb   :  { %v267_v46 = vmul.f32 %v265_v45, %v5268_v15  ;;  %v268_v50 = vadd.f32 %v266_v44, %v5248_v6 }
 0x1cd   :  { %v269_v51 = vadd.f32 %v5253_v7, %v267_v46 }
 0x1ce   :  { %250 = vrot.lane.b32.xlu1 %v5303_v42, %s5182_s26  ;;  %248 = vrot.lane.b32.xlu0 %v5297_v39, %s5182_s26 }
 0x1cf   :  { %v323_v52 = vpack.c.bf16 %v269_v51, %v268_v50  ;;  %v202_v50 = vsub.s32 1, %v5238_v4 }
 0x1d1   :  { %4610 = vmatprep.mubr.msk.bf16.mxu0 %vm68_vm2, %v323_v52  ;;  %v203_v51 = vrot.slane %v5243_v5, %v202_v50 }
 0x1d3   :  { %v204_v52 = vadd.f32 %v203_v51, %v5297_v39  ;;  %v205_v53 = vadd.f32 %v203_v51, %v5303_v42 }
 0x1d5   :  { %v206_v54 = vmul.f32 %v204_v52, %v5265_v14  ;;  %v207_v55 = vmul.f32 %v205_v53, %v5268_v15 }
 0x1d7   :  { %v208_v58 = vadd.f32 %v206_v54, %v5248_v6  ;;  %v209_v59 = vadd.f32 %v5253_v7, %v207_v55 }
 0x238   :  { %v233_v16 = vpop.permute.xlu1 %232  ;;  %v217_v17 = vpop.permute.xlu0 %216 }
 0x239   :  { %v238_v19 = vadd.f32 %v233_v16, %v231_v11  ;;  %v222_v20 = vadd.f32 %v217_v17, %v213_v12 }
 0x23b   :  { %v240_v23 = vmul.f32 %v238_v19, %v5265_v14  ;;  %v224_v24 = vmul.f32 %v222_v20, %v5265_v14 }
 0x23c   :  { %v235_v25 = vpop.permute.xlu1 %234  ;;  %v219_v26 = vpop.permute.xlu0 %218 }
 0x23d   :  { %v239_v28 = vadd.f32 %v235_v25, %v231_v11  ;;  %v223_v29 = vadd.f32 %v219_v26, %v213_v12  ;;  %v242_v33 = vadd.f32 %v240_v23, %v5248_v6  ;;  %v226_v34 = vadd.f32 %v224_v24, %v5248_v6  ;;  %v5137_v11 = vld [vmem:[%s5814_s5] sm:$0xff]   ;;  %s5183_s5 = smov 112  }
 0x23e   :  { %4730 = vmatpush3.bf16.msra.mxu1 %v5137_v11  ;;  %v541_v23 = vrot.slane %v5243_v5, %v540_v22 }
 0x23f   :  { %v241_v31 = vmul.f32 %v239_v28, %v5268_v15  ;;  %v225_v32 = vmul.f32 %v223_v29, %v5268_v15  ;;  %4740 = vmatprep.subr.mxu1 %v5177_v1 }
 0x240   :  { %v251_v35 = vpop.permute.xlu1 %250  ;;  %v249_v36 = vpop.permute.xlu0 %248 }
 0x241   :  { %v243_v37 = vadd.f32 %v5253_v7, %v241_v31  ;;  %v227_v38 = vadd.f32 %v5253_v7, %v225_v32  ;;  %v255_v40 = vadd.f32 %v251_v35, %v247_v30  ;;  %v254_v41 = vadd.f32 %v249_v36, %v247_v30 }
 0x243   :  { %v257_v43 = vmul.f32 %v255_v40, %v5268_v15  ;;  %v256_v44 = vmul.f32 %v254_v41, %v5265_v14  ;;  %v5082_v45 = vpack.i.bf16 %v243_v37, %v242_v33  ;;  %v5077_v46 = vpack.i.bf16 %v227_v38, %v226_v34 }
 0x245   :  { %v259_v47 = vadd.f32 %v5253_v7, %v257_v43  ;;  %v258_v48 = vadd.f32 %v256_v44, %v5248_v6  ;;  %5083 = vrot.lane.b32.xlu1 %v5082_v45, %s5180_s3  ;;  %5078 = vrot.lane.b32.xlu0 %v5077_v46, %s5182_s26 }
 0x247   :  { %v5087_v49 = vpack.i.bf16 %v259_v47, %v258_v48 }
 0x249   :  { %5088 = vrot.lane.b32.xlu0 %v5087_v49, %s5181_s19 }
 0x2b7   :  { %v5084_v56 = vpop.permute.xlu1 %5083  ;;  %v5079_v57 = vpop.permute.xlu0 %5078 }
 0x2b8   :  { %v5081_v60 = vunpack.i.h.bf16 %v5079_v57  ;;  %v5080_v61 = vunpack.i.l.bf16 %v5079_v57  ;;  %v5086_v62 = vunpack.i.h.bf16 %v5084_v56  ;;  %v5085_v63 = vunpack.i.l.bf16 %v5084_v56 }
 0x2ba   :  { %v294_v2 = vsel %vm68_vm2, %v208_v58, %v5080_v61  ;;  %v295_v39 = vsel %vm68_vm2, %v209_v59, %v5081_v60 }
 0x2bb   :  { %v5089_v42 = vpop.permute.xlu0 %5088  ;;  %v297_v15 = vsel %vm296_vm5, %v294_v2, %v5085_v63  ;;  %v298_v8 = vsel %vm296_vm5, %v295_v39, %v5086_v62 }
 0x2bc   :  { %v5091_v14 = vunpack.i.h.bf16 %v5089_v42  ;;  %v5090_v3 = vunpack.i.l.bf16 %v5089_v42 }
 0x2be   :  { %v300_v6 = vsel %vm299_vm6, %v297_v15, %v5090_v3  ;;  %v301_v7 = vsel %vm299_vm6, %v298_v8, %v5091_v14 }
 0x2bf   :  { %v322_v9 = vpack.c.bf16 %v301_v7, %v300_v6 }
 0x2c1   :  { %460 = vmatmul.mubr.bf16.vlgmr.msra.gmra.mrb[4].mxu0 %v322_v9 }
 0x2c2   :  { %4737 = vmatprep.mubr.msk.f32.mxu0 %vm5178_vm0, %v5177_v1 }
 0x394   :  { %v5422_v12 = vpop.f32.mrb[4].mxu0 }
 0x395   :  { %v463_v13 = vpop.f32.mrb[5].mxu0 }
 0x396   :  { %v5424_v16 = vpop.f32.mrb[6].mxu0  ;;  %5144 = vtanh.f32 %v463_v13 }
 0x397   :  { %v5428_v17 = vpack.c.bf16 %v5424_v16, %v5422_v12  ;;  %v467_v18 = vpop.f32.mrb[7].mxu0 }
 0x398   :  { %5146 = vtanh.f32 %v467_v18 }
 0x399   :  { %v5440_v42 = vunpack.c.l.bf16 %v5428_v17  ;;  %v5460_v22 = vunpack.c.h.bf16 %v5428_v17  ;;  %v5472_v17 = vld [vmem:[%s5811_s1 + $0x8] sm:$0x3] }
 0x3a0   :  { %v5145_v19 = vpop.eup %5144 }
 0x3a2   :  { %v5147_v20 = vpop.eup %5146 }
 0x3a3   :  { %v486_v21 = vpack.c.bf16 %v5147_v20, %v5145_v19 }
 0x3a5   :  { %4732 = vmatmul.mubr.msk.bf16.vlgmr.msra.gmra.mrb[4].mxu1 %vm493_vm7, %v486_v21 }
 0x3a6   :  { %4742 = vmatprep.mubr.msk.f32.mxu1 %vm5178_vm0, %v5177_v1 }
 0x478   :  { %v531_v24 = vpop.f32.mrb[4].mxu1 }
 0x479   :  { %v4733_v25 = vpop.f32.mrb[5].mxu1  ;;  %v542_v27 = vadd.f32 %v541_v23, %v531_v24 }
 0x47a   :  { %v534_v26 = vpop.f32.mrb[6].mxu1 }
 0x47b   :  { %v543_v28 = vadd.f32 %v541_v23, %v534_v26  ;;  %v4734_v29 = vpop.f32.mrb[7].mxu1 }
 0x47d   :  { %v547_v30 = vpack.c.bf16 %v543_v28, %v542_v27  ;;  %v614_v27 = vrot.slane %v5472_v17, %v202_v50  ;;  %v5092_v28 = vpack.i.bf16 %v5460_v22, %v5440_v42 }
 0x47f   :  { %v548_v31 = vunpack.c.l.bf16 %v547_v30  ;;  %v549_v32 = vunpack.c.h.bf16 %v547_v30 }
 0x481   :  { %v550_v33 = vmul.f32 1.442695, %v548_v31  ;;  %v552_v34 = vmul.f32 1.442695, %v549_v32 }
 0x483   :  { %5148 = vpow2.f32 %v550_v33 }
 0x484   :  { %5150 = vpow2.f32 %v552_v34 }
 0x48d   :  { %v5149_v35 = vpop.eup %5148 }
 0x48e   :  { %v5151_v36 = vpop.eup %5150  ;;  %v554_v37 = vsub.f32 0.0, %v5149_v35 }
 0x48f   :  { %v555_v38 = vsub.f32 0.0, %v5151_v36 }
 0x490   :  { %v557_v40 = vrot.slane %v554_v37, 7 }
 0x491   :  { %v573_v41 = vrot.slane %v555_v38, 7 }
 0x492   :  { %v559_v5 = vsel %vm33_vm1, 0.0, %v557_v40 }
 0x493   :  { %v560_v43 = vadd.f32 %v559_v5, %v554_v37  ;;  %v575_v44 = vsel %vm33_vm1, 0.0, %v573_v41 }
 0x494   :  { %v576_v45 = vadd.f32 %v575_v44, %v555_v38 }
 0x495   :  { %v562_v46 = vrot.slane %v560_v43, 6 }
 0x496   :  { %v578_v47 = vrot.slane %v576_v45, 6 }
 0x497   :  { %v565_v48 = vsel %vm564_vm8, 0.0, %v562_v46 }
 0x498   :  { %v566_v49 = vadd.f32 %v565_v48, %v560_v43  ;;  %v580_v51 = vsel %vm564_vm8, 0.0, %v578_v47 }
 0x499   :  { %v581_v52 = vadd.f32 %v580_v51, %v576_v45 }
 0x49a   :  { %v568_v53 = vrot.slane %v566_v49, 4 }
 0x49b   :  { %v583_v54 = vrot.slane %v581_v52, 4 }
 0x49c   :  { %v570_v55 = vsel %vm150_vm3, 0.0, %v568_v53 }
 0x49d   :  { %v571_v56 = vadd.f32 %v570_v55, %v566_v49  ;;  %v585_v57 = vsel %vm150_vm3, 0.0, %v583_v54 }
 0x49e   :  { %v586_v58 = vadd.f32 %v585_v57, %v581_v52 }
 0x49f   :  { %v587_v59 = vsub.f32 %v571_v56, %v554_v37  ;;  %v603_v60 = vsub.f32 0.0, %v571_v56 }
 0x4a0   :  { %v588_v61 = vsub.f32 %v586_v58, %v555_v38  ;;  %v604_v18 = vsub.f32 0.0, %v586_v58 }
 0x4a1   :  { %v589_v62 = vmul.f32 1.442695, %v587_v59  ;;  %v605_v63 = vmul.f32 1.442695, %v603_v60 }
 0x4a2   :  { %v591_v2 = vmul.f32 1.442695, %v588_v61  ;;  %v607_v19 = vmul.f32 1.442695, %v604_v18 }
 0x4a3   :  { %5152 = vpow2.f32 %v589_v62 }
 0x4a4   :  { %5154 = vpow2.f32 %v605_v63 }
 0x4a5   :  { %5156 = vpow2.f32 %v591_v2 }
 0x4a6   :  { %5158 = vpow2.f32 %v607_v19 }
 0x4ad   :  { %v5153_v39 = vpop.eup %5152 }
 0x4ae   :  { %595 = vrot.lane.b32.xlu1 %v5153_v39, %s5180_s3  ;;  %v5155_v14 = vpop.eup %5154 }
 0x4af   :  { %v609_v3 = vmul.f32 %v5155_v14, %v5440_v42  ;;  %v5157_v15 = vpop.eup %5156 }
 0x4b0   :  { %v5159_v25 = vpop.eup %5158 }
 0x4b1   :  { %v642_v8 = vsel %vm493_vm7, %v609_v3, 0  ;;  %v5475_v26 = vmul.f32 %v5159_v25, %v5460_v22 }
 0x4b2   :  { %597 = vrot.lane.b32.xlu1 %v5157_v15, %s5180_s3  ;;  %v5446_v6 = vand.u32 4294901760, %v642_v8 }
 0x4b3   :  { %v2516_v15 = vsel %vm493_vm7, %v5475_v26, 0 }
 0x4b4   :  { %4736 = vmatpush3.xpose.msra.mxu0 %v5446_v6  ;;  %v5450_v7 = vsub.f32 %v642_v8, %v5446_v6 }
 0x4b5   :  { %4795 = vmatprep.subr.mxu0 %v5177_v1 }
 0x4b6   :  { %1574 = vrot.lane.b32.xlu1 %v609_v3, %s5183_s5  ;;  %v723_v9 = vand.u32 4294901760, %v5450_v7 }
 0x4b8   :  { %v724_v11 = vsub.f32 %v5450_v7, %v723_v9 }
 0x4ba   :  { %v725_v13 = vand.u32 4294901760, %v724_v11 }
 0x4bc   :  { %4741 = vmatpush3.xpose.msra.mxu1 %v725_v13 }
 0x4bd   :  { %4745 = vmatprep.subr.mxu1 %v5177_v1 }
 0x520   :  { %v596_v20 = vpop.permute.xlu1 %595 }
 0x521   :  { %v601_v21 = vmul.f32 %v596_v20, %v5440_v42 }
 0x523   :  { %637 = vrot.lane.b32.xlu0 %v601_v21, %s5180_s3 }
 0x524   :  { %v598_v23 = vpop.permute.xlu1 %597 }
 0x525   :  { %v602_v24 = vmul.f32 %v598_v23, %v5460_v22 }
 0x527   :  { %1572 = vrot.lane.b32.xlu0 %v601_v21, %s5184_s14  ;;  %3444 = vrot.lane.b32.xlu1 %v602_v24, %s5184_s14 }
 0x528   :  { %v1575_v29 = vpop.permute.xlu1 %1574 }
 0x529   :  { %v1578_v30 = vsel %vm493_vm7, %v1575_v29, 0 }
 0x52a   :  { %v5492_v31 = vand.u32 4294901760, %v1578_v30 }
 0x52b   :  { %1099 = vrot.lane.b32.xlu1 %v5440_v42, %s5181_s19  ;;  %2511 = vrot.lane.b32.xlu0 %v602_v24, %s5180_s3 }
 0x52c   :  { %v5498_v34 = vsub.f32 %v1578_v30, %v5492_v31 }
 0x52e   :  { %v1659_v5 = vand.u32 4294901760, %v5498_v34 }
 0x52f   :  { %2973 = vrot.lane.b32.xlu1 %v5460_v22, %s5181_s19  ;;  %3446 = vrot.lane.b32.xlu0 %v5475_v26, %s5183_s5 }
 0x530   :  { %v1660_v49 = vsub.f32 %v5498_v34, %v1659_v5 }
 0x532   :  { %v1661_v54 = vand.u32 4294901760, %v1660_v49 }
 0x533   :  { %616 = vrot.lane.b32.xlu1 %v614_v27, %s5180_s3  ;;  %2034 = vrot.lane.b32.xlu0 %v5440_v42, %s5185_s17 }
 0x537   :  { %3906 = vrot.lane.b32.xlu0 %v5460_v22, %s5185_s17 }
 0x53b   :  { %5093 = vrot.lane.b32.xlu0 %v5092_v28, %s5180_s3 }
 0x595   :  { %v638_v50 = vpop.permute.xlu0 %637 }
 0x596   :  { %v639_v32 = vsel %vm493_vm7, %v638_v50, 0 }
 0x597   :  { %v5495_v33 = vand.u32 4294901760, %v639_v32 }
 0x599   :  { %v711_v35 = vsub.f32 %v639_v32, %v5495_v33  ;;  %4743 = vmatmul.mubr.f32.vlgmr.msra.gmra.mrb[8].mxu1 %v5495_v33  ;;  %v1573_v36 = vpop.permute.xlu0 %1572  ;;  %v5502_v37 = vpop.permute.xlu1 %3444 }
 0x59a   :  { %4746 = vmatpush3.xpose.msra.mxu1 %v5450_v7  ;;  %v1576_v38 = vsel %vm493_vm7, %v1573_v36, 0  ;;  %4747 = vmatprep.mubr.msk.f32.mxu1 %vm5178_vm0, %v5177_v1  ;;  %v3448_v23 = vsel %vm493_vm7, %v5502_v37, 0 }
 0x59b   :  { %v712_v40 = vand.u32 4294901760, %v711_v35  ;;  %v5508_v41 = vand.u32 4294901760, %v1576_v38  ;;  %4750 = vmatprep.subr.mxu1 %v5177_v1  ;;  %v3518_v25 = vand.u32 4294901760, %v3448_v23 }
 0x59d   :  { %v713_v43 = vsub.f32 %v711_v35, %v712_v40  ;;  %v1647_v44 = vsub.f32 %v1576_v38, %v5508_v41  ;;  %v2512_v45 = vpop.permute.xlu0 %2511  ;;  %v5513_v48 = vpop.permute.xlu1 %1099  ;;  %v3519_v27 = vsub.f32 %v3448_v23, %v3518_v25 }
 0x59e   :  { %v5560_v14 = vand.u32 4294901760, %v5513_v48  ;;  %v2513_v3 = vsel %vm493_vm7, %v2512_v45, 0  ;;  %v5627_v45 = vand.u32 127, %v43_v0 }
 0x59f   :  { %v714_v46 = vand.u32 4294901760, %v713_v43  ;;  %v1648_v47 = vand.u32 4294901760, %v1647_v44  ;;  %v2584_v8 = vand.u32 4294901760, %v2513_v3  ;;  %v3520_v29 = vand.u32 4294901760, %v3519_v27 }
 0x5a0   :  { %vm635_vm9 = vcmp.lt.s32.totalorder %v5627_v45, %v5238_v4 }
 0x5a1   :  { %v1649_v51 = vsub.f32 %v1647_v44, %v1648_v47  ;;  %4738 = vmatmul.mubr.f32.vlgmr.msra.gmra.mrb[8].mxu0 %v714_v46  ;;  %4748 = vmatmul.mubr.f32.vlgmr.msra.gmra.mrb[8].mxu1 %v711_v35  ;;  %v5516_v52 = vpop.permute.xlu0 %3446  ;;  %v5526_v55 = vpop.permute.xlu1 %2973  ;;  %v2585_v7 = vsub.f32 %v2513_v3, %v2584_v8 }
 0x5a2   :  { %4751 = vmatpush3.xpose.msra.mxu1 %v5446_v6  ;;  %4796 = vmatpush3.xpose.msra.mxu0 %v5492_v31  ;;  %v3450_v24 = vsel %vm493_vm7, %v5516_v52, 0 }
 0x5a3   :  { %v1650_v53 = vand.u32 4294901760, %v1649_v51  ;;  %4797 = vmatprep.mubr.msk.f32.mxu0 %vm5178_vm0, %v5177_v1  ;;  %4800 = vmatprep.subr.mxu0 %v5177_v1  ;;  %v2586_v11 = vand.u32 4294901760, %v2585_v7  ;;  %v3453_v26 = vand.u32 4294901760, %v3450_v24  ;;  %v1188_v51 = vsub.f32 %v5513_v48, %v5560_v14 }
 0x5a4   :  { %4752 = vmatprep.mubr.msk.f32.mxu1 %vm5178_vm0, %v5177_v1  ;;  %4755 = vmatprep.subr.mxu1 %v5177_v1 }
 0x5a5   :  { %v5528_v56 = vpop.permute.xlu0 %2034  ;;  %4798 = vmatmul.mubr.f32.vlgmr.msra.gmra.mrb[10].mxu0 %v1650_v53  ;;  %v617_v58 = vpop.permute.xlu1 %616  ;;  %v2587_v18 = vsub.f32 %v2585_v7, %v2586_v11  ;;  %v3530_v28 = vsub.f32 %v3450_v24, %v3453_v26 }
 0x5a6   :  { %4801 = vmatpush3.xpose.msra.mxu0 %v1661_v54  ;;  %4802 = vmatprep.mubr.msk.f32.mxu0 %vm5178_vm0, %v5177_v1  ;;  %v619_v60 = vmul.f32 %v617_v58, %v5440_v42  ;;  %v620_v61 = vmul.f32 %v617_v58, %v5460_v22  ;;  %v1189_v58 = vand.u32 4294901760, %v1188_v51 }
 0x5a7   :  { %4805 = vmatprep.subr.mxu0 %v5177_v1  ;;  %v2588_v20 = vand.u32 4294901760, %v2587_v18  ;;  %v3531_v30 = vand.u32 4294901760, %v3530_v28 }
 0x5a9   :  { %4753 = vmatmul.mubr.f32.vlgmr.msra.gmra.mrb[8].mxu1 %v712_v40  ;;  %v5533_v57 = vpop.permute.xlu0 %3906  ;;  %v3532_v50 = vsub.f32 %v3530_v28, %v3531_v30 }
 0x5aa   :  { %4756 = vmatpush3.xpose.msra.mxu1 %v723_v9  ;;  %4757 = vmatprep.mubr.msk.f32.mxu1 %vm5178_vm0, %v5177_v1 }
 0x5ab   :  { %4760 = vmatprep.subr.mxu1 %v5177_v1 }
 0x5ad   :  { %v5094_v59 = vpop.permute.xlu0 %5093  ;;  %4803 = vmatmul.mubr.f32.vlgmr.msra.gmra.mrb[10].mxu0 %v5508_v41 }
 0x5ae   :  { %v5096_v62 = vunpack.i.h.bf16 %v5094_v59  ;;  %v5095_v63 = vunpack.i.l.bf16 %v5094_v59  ;;  %4806 = vmatpush3.xpose.msra.mxu0 %v5498_v34  ;;  %4807 = vmatprep.mubr.msk.f32.mxu0 %vm5178_vm0, %v5177_v1 }
 0x5af   :  { %4810 = vmatprep.subr.mxu0 %v5177_v1 }
 0x5b0   :  { %v629_v2 = vmul.f32 %v5095_v63, %v619_v60  ;;  %v630_v39 = vmul.f32 %v5096_v62, %v620_v61  ;;  %v1190_v61 = vsub.f32 %v1188_v51, %v1189_v58 }
 0x5b1   :  { %4758 = vmatmul.mubr.f32.vlgmr.msra.gmra.mrb[8].mxu1 %v5495_v33 }
 0x5b2   :  { %4761 = vmatpush3.xpose.msra.mxu1 %v5446_v6  ;;  %3899 = vrot.lane.b32.xlu0 %v630_v39, %s5184_s14  ;;  %v2519_v6 = vand.u32 4294901760, %v2516_v15 }
 0x5b3   :  { %2027 = vrot.lane.b32.xlu1 %v629_v2, %s5184_s14  ;;  %4762 = vmatprep.mubr.msk.f32.mxu1 %vm5178_vm0, %v5177_v1 }
 0x5b4   :  { %4765 = vmatprep.subr.mxu1 %v5177_v1  ;;  %v2596_v9 = vsub.f32 %v2516_v15, %v2519_v6 }
 0x5b5   :  { %4808 = vmatmul.mubr.f32.vlgmr.msra.gmra.mrb[10].mxu0 %v1647_v44 }
 0x5b6   :  { %4811 = vmatpush3.xpose.msra.mxu0 %v5492_v31  ;;  %2966 = vrot.lane.b32.xlu0 %v630_v39, %s5180_s3  ;;  %v2597_v13 = vand.u32 4294901760, %v2596_v9 }
 0x5b7   :  { %1092 = vrot.lane.b32.xlu1 %v629_v2, %s5180_s3  ;;  %4812 = vmatprep.mubr.msk.f32.mxu0 %vm5178_vm0, %v5177_v1  ;;  %v1191_v2 = vand.u32 4294901760, %v1190_v61 }
 0x5b8   :  { %4815 = vmatprep.subr.mxu0 %v5177_v1  ;;  %v2598_v19 = vsub.f32 %v2596_v9, %v2597_v13 }
 0x5b9   :  { %4763 = vmatmul.mubr.f32.vlgmr.msra.gmra.mrb[8].mxu1 %v5495_v33  ;;  %v3533_v33 = vand.u32 4294901760, %v3532_v50  ;;  %v2984_v50 = vand.u32 4294901760, %v5526_v55 }
 0x5ba   :  { %4766 = vmatpush3.msra.mxu1 %v5560_v14  ;;  %4767 = vmatprep.mubr.msk.f32.mxu1 %vm5178_vm0, %v5177_v1  ;;  %v2599_v21 = vand.u32 4294901760, %v2598_v19 }
 0x5bb   :  { %4770 = vmatprep.subr.mxu1 %v5177_v1 }
 0x5bd   :  { %4813 = vmatmul.mubr.f32.vlgmr.msra.gmra.mrb[10].mxu0 %v1648_v47 }
 0x5be   :  { %4816 = vmatpush3.xpose.msra.mxu0 %v1659_v5  ;;  %4817 = vmatprep.mubr.msk.f32.mxu0 %vm5178_vm0, %v5177_v1 }
 0x5bf   :  { %4820 = vmatprep.subr.mxu0 %v5177_v1 }
 0x5c5   :  { %4818 = vmatmul.mubr.f32.vlgmr.msra.gmra.mrb[10].mxu0 %v5508_v41 }
 0x5c6   :  { %4821 = vmatpush3.xpose.msra.mxu0 %v5492_v31  ;;  %4822 = vmatprep.mubr.msk.f32.mxu0 %vm5178_vm0, %v5177_v1  ;;  %v3521_v31 = vsub.f32 %v3519_v27, %v3520_v29 }
 0x5c7   :  { %4855 = vmatprep.subr.mxu0 %v5177_v1 }
 0x5c8   :  { %v3522_v32 = vand.u32 4294901760, %v3521_v31 }
 0x5cd   :  { %4823 = vmatmul.mubr.f32.vlgmr.msra.gmra.mrb[10].mxu0 %v5508_v41 }
 0x5ce   :  { %4856 = vmatpush3.xpose.msra.mxu0 %v2519_v6  ;;  %4857 = vmatprep.mubr.msk.f32.mxu0 %vm5178_vm0, %v5177_v1 }
 0x5cf   :  { %4860 = vmatprep.subr.mxu0 %v5177_v1 }
 0x5d1   :  { %4858 = vmatmul.mubr.f32.vlgmr.msra.gmra.mrb[12].mxu0 %v2588_v20 }
 0x5d2   :  { %4861 = vmatpush3.xpose.msra.mxu0 %v2599_v21  ;;  %4862 = vmatprep.mubr.msk.f32.mxu0 %vm5178_vm0, %v5177_v1 }
 0x5d3   :  { %4865 = vmatprep.subr.mxu0 %v5177_v1 }
 0x5d9   :  { %4863 = vmatmul.mubr.f32.vlgmr.msra.gmra.mrb[12].mxu0 %v2584_v8 }
 0x5da   :  { %4866 = vmatpush3.xpose.msra.mxu0 %v2596_v9  ;;  %4867 = vmatprep.mubr.msk.f32.mxu0 %vm5178_vm0, %v5177_v1 }
 0x5db   :  { %4870 = vmatprep.subr.mxu0 %v5177_v1 }
 0x5e1   :  { %4868 = vmatmul.mubr.f32.vlgmr.msra.gmra.mrb[12].mxu0 %v2585_v7 }
 0x5e2   :  { %4871 = vmatpush3.xpose.msra.mxu0 %v2519_v6  ;;  %4872 = vmatprep.mubr.msk.f32.mxu0 %vm5178_vm0, %v5177_v1 }
 0x5e3   :  { %4875 = vmatprep.subr.mxu0 %v5177_v1 }
 0x5e9   :  { %4873 = vmatmul.mubr.f32.vlgmr.msra.gmra.mrb[12].mxu0 %v2586_v11 }
 0x5ea   :  { %4876 = vmatpush3.xpose.msra.mxu0 %v2597_v13  ;;  %4877 = vmatprep.mubr.msk.f32.mxu0 %vm5178_vm0, %v5177_v1  ;;  %v2045_v13 = vand.u32 4294901760, %v5528_v56 }
 0x5eb   :  { %4880 = vmatprep.subr.mxu0 %v5177_v1 }
 0x5ec   :  { %v2122_v24 = vsub.f32 %v5528_v56, %v2045_v13 }
 0x5f1   :  { %4878 = vmatmul.mubr.f32.vlgmr.msra.gmra.mrb[12].mxu0 %v2584_v8 }
 0x5f2   :  { %4881 = vmatpush3.xpose.msra.mxu0 %v2519_v6  ;;  %4882 = vmatprep.mubr.msk.f32.mxu0 %vm5178_vm0, %v5177_v1 }
 0x5f3   :  { %4915 = vmatprep.subr.mxu0 %v5177_v1 }
 0x5f9   :  { %4883 = vmatmul.mubr.f32.vlgmr.msra.gmra.mrb[12].mxu0 %v2584_v8 }
 0x5fa   :  { %4916 = vmatpush3.xpose.msra.mxu0 %v3453_v26  ;;  %4917 = vmatprep.mubr.msk.f32.mxu0 %vm5178_vm0, %v5177_v1 }
 0x5fb   :  { %4920 = vmatprep.subr.mxu0 %v5177_v1 }
 0x5fd   :  { %4918 = vmatmul.mubr.f32.vlgmr.msra.gmra.mrb[14].mxu0 %v3522_v32 }
 0x5fe   :  { %4921 = vmatpush3.xpose.msra.mxu0 %v3533_v33  ;;  %4922 = vmatprep.mubr.msk.f32.mxu0 %vm5178_vm0, %v5177_v1  ;;  %v3061_v33 = vsub.f32 %v5526_v55, %v2984_v50 }
 0x5ff   :  { %4925 = vmatprep.subr.mxu0 %v5177_v1 }
 0x605   :  { %4923 = vmatmul.mubr.f32.vlgmr.msra.gmra.mrb[14].mxu0 %v3518_v25 }
 0x606   :  { %4926 = vmatpush3.xpose.msra.mxu0 %v3530_v28  ;;  %4927 = vmatprep.mubr.msk.f32.mxu0 %vm5178_vm0, %v5177_v1 }
 0x607   :  { %4930 = vmatprep.subr.mxu0 %v5177_v1 }
 0x60d   :  { %4928 = vmatmul.mubr.f32.vlgmr.msra.gmra.mrb[14].mxu0 %v3519_v27 }
 0x60e   :  { %4931 = vmatpush3.xpose.msra.mxu0 %v3453_v26  ;;  %4932 = vmatprep.mubr.msk.f32.mxu0 %vm5178_vm0, %v5177_v1 }
 0x60f   :  { %4935 = vmatprep.subr.mxu0 %v5177_v1 }
 0x615   :  { %4933 = vmatmul.mubr.f32.vlgmr.msra.gmra.mrb[14].mxu0 %v3520_v29 }
 0x616   :  { %4936 = vmatpush3.xpose.msra.mxu0 %v3531_v30  ;;  %4937 = vmatprep.mubr.msk.f32.mxu0 %vm5178_vm0, %v5177_v1 }
 0x617   :  { %4940 = vmatprep.subr.mxu0 %v5177_v1 }
 0x61d   :  { %4938 = vmatmul.mubr.f32.vlgmr.msra.gmra.mrb[14].mxu0 %v3518_v25 }
 0x61e   :  { %4941 = vmatpush3.xpose.msra.mxu0 %v3453_v26  ;;  %4942 = vmatprep.mubr.msk.f32.mxu0 %vm5178_vm0, %v5177_v1  ;;  %v2123_v26 = vand.u32 4294901760, %v2122_v24 }
 0x61f   :  { %4975 = vmatprep.subr.bf16.mxu0 %v5177_v1 }
 0x620   :  { %v2124_v27 = vsub.f32 %v2122_v24, %v2123_v26 }
 0x622   :  { %v2125_v56 = vand.u32 4294901760, %v2124_v27 }
 0x624   :  { %v3900_v34 = vpop.permute.xlu0 %3899 }
 0x625   :  { %v2028_v35 = vpop.permute.xlu1 %2027  ;;  %4943 = vmatmul.mubr.f32.vlgmr.msra.gmra.mrb[14].mxu0 %v3518_v25  ;;  %v3902_v36 = vsel %vm493_vm7, %v3900_v34, 0.0 }
 0x626   :  { %3903 = vadd.xlane.f32.xlu0 %v3902_v36  ;;  %v2030_v37 = vsel %vm493_vm7, %v2028_v35, 0.0  ;;  %4979 = vmatprep.mubr.msk.bf16.mxu0 %vm5178_vm0, %v5177_v1  ;;  %v3062_v35 = vand.u32 4294901760, %v3061_v33 }
 0x627   :  { %2031 = vadd.xlane.f32.xlu1 %v2030_v37 }
 0x628   :  { %v2967_v38 = vpop.permute.xlu0 %2966  ;;  %v3063_v37 = vsub.f32 %v3061_v33, %v3062_v35 }
 0x629   :  { %v1093_v40 = vpop.permute.xlu1 %1092  ;;  %v2969_v41 = vsel %vm493_vm7, %v2967_v38, 0.0 }
 0x62a   :  { %v1095_v5 = vsel %vm493_vm7, %v1093_v40, 0.0  ;;  %v3064_v55 = vand.u32 4294901760, %v3063_v37 }
 0x62b   :  { %2970 = vadd.xlane.f32.xlu1 %v2969_v41  ;;  %1096 = vadd.xlane.f32.xlu0 %v1095_v5 }
 0x674   :  { %v716_v43 = vpop.f32.mrb[8].mxu0 }
 0x675   :  { %v4739_v44 = vpop.f32.mrb[9].mxu0 }
 0x68c   :  { %v1086_v46 = vpop.f32.mrb[8].mxu1 }
 0x68d   :  { %v4983_v47 = vadd.f32 %v1086_v46, %v716_v43  ;;  %v4764_v49 = vpop.f32.mrb[9].mxu1  ;;  %v3917_v46 = vand.u32 4294901760, %v5533_v57 }
 0x68f   :  { %v1090_v52 = vsel %vm635_vm9, %v4983_v47, 0.0  ;;  %v3994_v49 = vsub.f32 %v5533_v57, %v3917_v46 }
 0x690   :  { %v1108_v53 = vsel %vm1106_vm10, %v1090_v52, 0 }
 0x691   :  { %v1176_v54 = vand.u32 4294901760, %v1108_v53 }
 0x693   :  { %v1177_v59 = vsub.f32 %v1108_v53, %v1176_v54 }
 0x695   :  { %v1178_v60 = vand.u32 4294901760, %v1177_v59 }
 0x697   :  { %v1179_v62 = vsub.f32 %v1177_v59, %v1178_v60 }
 0x699   :  { %v1180_v63 = vand.u32 4294901760, %v1179_v62 }
 0x69b   :  { %4768 = vmatmul.mubr.f32.vlgmr.msra.gmra.mrb[10].mxu1 %v1180_v63 }
 0x69c   :  { %4771 = vmatpush3.msra.mxu1 %v1191_v2  ;;  %4772 = vmatprep.mubr.msk.f32.mxu1 %vm5178_vm0, %v5177_v1 }
 0x69d   :  { %4775 = vmatprep.subr.mxu1 %v5177_v1 }
 0x6a0   :  { %v2022_v48 = vpop.f32.mrb[10].mxu0 }
 0x6a1   :  { %v4824_v39 = vpop.f32.mrb[11].mxu0  ;;  %v2026_v3 = vsel %vm635_vm9, %v2022_v48, 0.0 }
 0x6a2   :  { %v2042_v15 = vsel %vm1106_vm10, %v2026_v3, 0 }
 0x6a3   :  { %4773 = vmatmul.mubr.f32.vlgmr.msra.gmra.mrb[10].mxu1 %v1176_v54  ;;  %v2110_v11 = vand.u32 4294901760, %v2042_v15 }
 0x6a4   :  { %4776 = vmatpush3.msra.mxu1 %v1188_v51  ;;  %4777 = vmatprep.mubr.msk.f32.mxu1 %vm5178_vm0, %v5177_v1  ;;  %v3995_v51 = vand.u32 4294901760, %v3994_v49 }
 0x6a5   :  { %4780 = vmatprep.subr.mxu1 %v5177_v1  ;;  %v2111_v23 = vsub.f32 %v2042_v15, %v2110_v11 }
 0x6a6   :  { %v3996_v53 = vsub.f32 %v3994_v49, %v3995_v51 }
 0x6a7   :  { %v2112_v25 = vand.u32 4294901760, %v2111_v23 }
 0x6a8   :  { %v3997_v57 = vand.u32 4294901760, %v3996_v53 }
 0x6ab   :  { %4778 = vmatmul.mubr.f32.vlgmr.msra.gmra.mrb[10].mxu1 %v1177_v59 }
 0x6ac   :  { %4781 = vmatpush3.msra.mxu1 %v5560_v14  ;;  %4782 = vmatprep.mubr.msk.f32.mxu1 %vm5178_vm0, %v5177_v1 }
 0x6ad   :  { %4785 = vmatprep.subr.mxu1 %v5177_v1 }
 0x6b3   :  { %v3904_v8 = vpop.xlane.xlu0 %3903  ;;  %4783 = vmatmul.mubr.f32.vlgmr.msra.gmra.mrb[10].mxu1 %v1178_v60 }
 0x6b4   :  { %v3905_v6 = vmul.f32 %v3904_v8, %v5460_v22  ;;  %v2032_v7 = vpop.xlane.xlu1 %2031  ;;  %4786 = vmatpush3.msra.mxu1 %v1189_v58  ;;  %4787 = vmatprep.mubr.msk.f32.mxu1 %vm5178_vm0, %v5177_v1 }
 0x6b5   :  { %v2033_v9 = vmul.f32 %v2032_v7, %v5440_v42  ;;  %4790 = vmatprep.subr.mxu1 %v5177_v1 }
 0x6b6   :  { %3910 = vrot.lane.b32.xlu1 %v3905_v6, %s5185_s17 }
 0x6b7   :  { %2038 = vrot.lane.b32.xlu0 %v2033_v9, %s5185_s17 }
 0x6b8   :  { %v1097_v18 = vpop.xlane.xlu0 %1096  ;;  %v2971_v19 = vpop.xlane.xlu1 %2970 }
 0x6b9   :  { %v1098_v20 = vmul.f32 %v1097_v18, %v5440_v42  ;;  %v2972_v21 = vmul.f32 %v2971_v19, %v5460_v22  ;;  %v2113_v42 = vsub.f32 %v2111_v23, %v2112_v25 }
 0x6bb   :  { %1103 = vrot.lane.b32.xlu1 %v1098_v20, %s5181_s19  ;;  %2977 = vrot.lane.b32.xlu0 %v2972_v21, %s5181_s19  ;;  %v2114_v22 = vand.u32 4294901760, %v2113_v42 }
 0x6bc   :  { %4788 = vmatmul.mubr.f32.vlgmr.msra.gmra.mrb[10].mxu1 %v1176_v54 }
 0x6bd   :  { %4791 = vmatpush3.msra.mxu1 %v5560_v14  ;;  %4792 = vmatprep.mubr.msk.f32.mxu1 %vm5178_vm0, %v5177_v1 }
 0x6be   :  { %4825 = vmatprep.subr.mxu1 %v5177_v1 }
 0x6c4   :  { %4793 = vmatmul.mubr.f32.vlgmr.msra.gmra.mrb[10].mxu1 %v1176_v54 }
 0x6c5   :  { %4826 = vmatpush3.msra.mxu1 %v2045_v13  ;;  %4827 = vmatprep.mubr.msk.f32.mxu1 %vm5178_vm0, %v5177_v1 }
 0x6c6   :  { %4830 = vmatprep.subr.mxu1 %v5177_v1 }
 0x6c8   :  { %4828 = vmatmul.mubr.f32.vlgmr.msra.gmra.mrb[12].mxu1 %v2114_v22 }
 0x6c9   :  { %4831 = vmatpush3.msra.mxu1 %v2125_v56  ;;  %4832 = vmatprep.mubr.msk.f32.mxu1 %vm5178_vm0, %v5177_v1 }
 0x6ca   :  { %4835 = vmatprep.subr.mxu1 %v5177_v1 }
 0x6cc   :  { %v2960_v14 = vpop.f32.mrb[12].mxu0 }
 0x6cd   :  { %v4884_v28 = vpop.f32.mrb[13].mxu0  ;;  %v2964_v29 = vsel %vm635_vm9, %v2960_v14, 0.0 }
 0x6ce   :  { %v2981_v30 = vsel %vm1106_vm10, %v2964_v29, 0 }
 0x6cf   :  { %v3049_v31 = vand.u32 4294901760, %v2981_v30 }
 0x6d0   :  { %4833 = vmatmul.mubr.f32.vlgmr.msra.gmra.mrb[12].mxu1 %v2110_v11 }
 0x6d1   :  { %4836 = vmatpush3.msra.mxu1 %v2122_v24  ;;  %4837 = vmatprep.mubr.msk.f32.mxu1 %vm5178_vm0, %v5177_v1  ;;  %v3050_v32 = vsub.f32 %v2981_v30, %v3049_v31 }
 0x6d2   :  { %4840 = vmatprep.subr.mxu1 %v5177_v1 }
 0x6d3   :  { %v3051_v34 = vand.u32 4294901760, %v3050_v32 }
 0x6d5   :  { %v3052_v36 = vsub.f32 %v3050_v32, %v3051_v34 }
 0x6d7   :  { %v3053_v38 = vand.u32 4294901760, %v3052_v36 }
 0x6d8   :  { %4838 = vmatmul.mubr.f32.vlgmr.msra.gmra.mrb[12].mxu1 %v2111_v23 }
 0x6d9   :  { %4841 = vmatpush3.msra.mxu1 %v2045_v13  ;;  %4842 = vmatprep.mubr.msk.f32.mxu1 %vm5178_vm0, %v5177_v1 }
 0x6da   :  { %4845 = vmatprep.subr.mxu1 %v5177_v1 }
 0x6e0   :  { %4843 = vmatmul.mubr.f32.vlgmr.msra.gmra.mrb[12].mxu1 %v2112_v25 }
 0x6e1   :  { %4846 = vmatpush3.msra.mxu1 %v2123_v26  ;;  %4847 = vmatprep.mubr.msk.f32.mxu1 %vm5178_vm0, %v5177_v1 }
 0x6e2   :  { %4850 = vmatprep.subr.mxu1 %v5177_v1 }
 0x6e8   :  { %4848 = vmatmul.mubr.f32.vlgmr.msra.gmra.mrb[12].mxu1 %v2110_v11 }
 0x6e9   :  { %4851 = vmatpush3.msra.mxu1 %v2045_v13  ;;  %4852 = vmatprep.mubr.msk.f32.mxu1 %vm5178_vm0, %v5177_v1 }
 0x6ea   :  { %4885 = vmatprep.subr.mxu1 %v5177_v1 }
 0x6f0   :  { %4853 = vmatmul.mubr.f32.vlgmr.msra.gmra.mrb[12].mxu1 %v2110_v11 }
 0x6f1   :  { %4886 = vmatpush3.msra.mxu1 %v2984_v50  ;;  %4887 = vmatprep.mubr.msk.f32.mxu1 %vm5178_vm0, %v5177_v1 }
 0x6f2   :  { %4890 = vmatprep.subr.mxu1 %v5177_v1 }
 0x6f4   :  { %4888 = vmatmul.mubr.f32.vlgmr.msra.gmra.mrb[14].mxu1 %v3053_v38 }
 0x6f5   :  { %4891 = vmatpush3.msra.mxu1 %v3064_v55  ;;  %4892 = vmatprep.mubr.msk.f32.mxu1 %vm5178_vm0, %v5177_v1 }
 0x6f6   :  { %4895 = vmatprep.subr.mxu1 %v5177_v1 }
 0x6f8   :  { %v3894_v40 = vpop.f32.mrb[14].mxu0 }
 0x6f9   :  { %v4944_v41 = vpop.f32.mrb[15].mxu0  ;;  %v3898_v5 = vsel %vm635_vm9, %v3894_v40, 0.0 }
 0x6fa   :  { %v3914_v43 = vsel %vm1106_vm10, %v3898_v5, 0 }
 0x6fb   :  { %v3982_v44 = vand.u32 4294901760, %v3914_v43 }
 0x6fc   :  { %4893 = vmatmul.mubr.f32.vlgmr.msra.gmra.mrb[14].mxu1 %v3049_v31 }
 0x6fd   :  { %4896 = vmatpush3.msra.mxu1 %v3061_v33  ;;  %4897 = vmatprep.mubr.msk.f32.mxu1 %vm5178_vm0, %v5177_v1  ;;  %v3983_v47 = vsub.f32 %v3914_v43, %v3982_v44 }
 0x6fe   :  { %4900 = vmatprep.subr.mxu1 %v5177_v1 }
 0x6ff   :  { %v3984_v45 = vand.u32 4294901760, %v3983_v47 }
 0x701   :  { %v3985_v52 = vsub.f32 %v3983_v47, %v3984_v45 }
 0x703   :  { %v3986_v54 = vand.u32 4294901760, %v3985_v52 }
 0x704   :  { %4898 = vmatmul.mubr.f32.vlgmr.msra.gmra.mrb[14].mxu1 %v3050_v32 }
 0x705   :  { %4901 = vmatpush3.msra.mxu1 %v2984_v50  ;;  %4902 = vmatprep.mubr.msk.f32.mxu1 %vm5178_vm0, %v5177_v1 }
 0x706   :  { %4905 = vmatprep.subr.mxu1 %v5177_v1 }
 0x70c   :  { %4903 = vmatmul.mubr.f32.vlgmr.msra.gmra.mrb[14].mxu1 %v3051_v34 }
 0x70d   :  { %4906 = vmatpush3.msra.mxu1 %v3062_v35  ;;  %4907 = vmatprep.mubr.msk.f32.mxu1 %vm5178_vm0, %v5177_v1 }
 0x70e   :  { %4910 = vmatprep.subr.mxu1 %v5177_v1 }
 0x714   :  { %4908 = vmatmul.mubr.f32.vlgmr.msra.gmra.mrb[14].mxu1 %v3049_v31 }
 0x715   :  { %4911 = vmatpush3.msra.mxu1 %v2984_v50  ;;  %4912 = vmatprep.mubr.msk.f32.mxu1 %vm5178_vm0, %v5177_v1 }
 0x716   :  { %4945 = vmatprep.subr.mxu1 %v5177_v1 }
 0x71c   :  { %4913 = vmatmul.mubr.f32.vlgmr.msra.gmra.mrb[14].mxu1 %v3049_v31 }
 0x71d   :  { %4946 = vmatpush3.msra.mxu1 %v3917_v46  ;;  %4947 = vmatprep.mubr.msk.f32.mxu1 %vm5178_vm0, %v5177_v1 }
 0x71e   :  { %4950 = vmatprep.subr.mxu1 %v5177_v1 }
 0x720   :  { %4948 = vmatmul.mubr.f32.vlgmr.msra.gmra.mrb[16].mxu1 %v3986_v54 }
 0x721   :  { %4951 = vmatpush3.msra.mxu1 %v3997_v57  ;;  %4952 = vmatprep.mubr.msk.f32.mxu1 %vm5178_vm0, %v5177_v1 }
 0x722   :  { %4955 = vmatprep.subr.mxu1 %v5177_v1 }
 0x728   :  { %4953 = vmatmul.mubr.f32.vlgmr.msra.gmra.mrb[16].mxu1 %v3982_v44  ;;  %v3911_v13 = vpop.permute.xlu1 %3910 }
 0x729   :  { %4956 = vmatpush3.msra.mxu1 %v3994_v49  ;;  %4957 = vmatprep.mubr.msk.f32.mxu1 %vm5178_vm0, %v5177_v1  ;;  %v2039_v60 = vpop.permute.xlu0 %2038 }
 0x72a   :  { %4960 = vmatprep.subr.mxu1 %v5177_v1 }
 0x72d   :  { %v2978_v3 = vpop.permute.xlu0 %2977  ;;  %v1104_v18 = vpop.permute.xlu1 %1103 }
 0x730   :  { %4958 = vmatmul.mubr.f32.vlgmr.msra.gmra.mrb[16].mxu1 %v3983_v47 }
 0x731   :  { %4961 = vmatpush3.msra.mxu1 %v3917_v46  ;;  %4962 = vmatprep.mubr.msk.f32.mxu1 %vm5178_vm0, %v5177_v1 }
 0x732   :  { %4965 = vmatprep.subr.mxu1 %v5177_v1 }
 0x738   :  { %4963 = vmatmul.mubr.f32.vlgmr.msra.gmra.mrb[16].mxu1 %v3984_v45 }
 0x739   :  { %4966 = vmatpush3.msra.mxu1 %v3995_v51  ;;  %4967 = vmatprep.mubr.msk.f32.mxu1 %vm5178_vm0, %v5177_v1 }
 0x73a   :  { %4970 = vmatprep.subr.mxu1 %v5177_v1 }
 0x740   :  { %4968 = vmatmul.mubr.f32.vlgmr.msra.gmra.mrb[16].mxu1 %v3982_v44 }
 0x741   :  { %4971 = vmatpush3.msra.mxu1 %v3917_v46  ;;  %4972 = vmatprep.mubr.msk.f32.mxu1 %vm5178_vm0, %v5177_v1  ;;  %v471_v46 = vsub.f32 0.0, %v5424_v16 }
 0x743   :  { %v474_v47 = vmul.f32 1.442695, %v471_v46 }
 0x745   :  { %5160 = vpow2.f32 %v474_v47 }
 0x748   :  { %4973 = vmatmul.mubr.f32.vlgmr.msra.gmra.mrb[16].mxu1 %v3982_v44 }
 0x74f   :  { %v5161_v49 = vpop.eup %5160 }
 0x750   :  { %v477_v52 = vadd.f32 1.0, %v5161_v49 }
 0x797   :  { %v1552_v58 = vpop.f32.mrb[10].mxu1 }
 0x798   :  { %v4794_v59 = vpop.f32.mrb[11].mxu1  ;;  %v4984_v19 = vadd.f32 %v1552_v58, %v1104_v18 }
 0x79a   :  { %v1556_v24 = vpack.c.bf16 %v4984_v19, %v4984_v19 }
 0x79c   :  { %v1557_v42 = vunpack.c.l.bf16 %v1556_v24 }
 0x79e   :  { %v1558_v22 = vsel %vm493_vm7, %v1557_v42, 0.0 }
 0x7c3   :  { %v2486_v61 = vpop.f32.mrb[12].mxu1 }
 0x7c4   :  { %v4985_v62 = vadd.f32 %v2486_v61, %v2039_v60  ;;  %v4854_v63 = vpop.f32.mrb[13].mxu1  ;;  %v470_v60 = vsub.f32 0.0, %v5422_v12 }
 0x7c6   :  { %v2490_v2 = vpack.c.bf16 %v4985_v62, %v4985_v62  ;;  %v472_v61 = vmul.f32 1.442695, %v470_v60 }
 0x7c8   :  { %v2491_v48 = vunpack.c.l.bf16 %v2490_v2 }
 0x7ca   :  { %v2492_v39 = vsel %vm493_vm7, %v2491_v48, 0.0 }
 0x7cb   :  { %2493 = vadd.xlane.f32.xlu1 %v2492_v39 }
 0x7ef   :  { %v3425_v15 = vpop.f32.mrb[14].mxu1 }
 0x7f0   :  { %v4986_v8 = vadd.f32 %v3425_v15, %v2978_v3  ;;  %v4914_v6 = vpop.f32.mrb[15].mxu1  ;;  %v5138_v3 = vld [vmem:[%s5815_s6] sm:$0xff]  }
 0x7f1   :  { %4976 = vmatpush3.bf16.msra.mxu0 %v5138_v3 }
 0x7f2   :  { %v3429_v7 = vpack.c.bf16 %v4986_v8, %v4986_v8  ;;  %4977 = vmatprep.subr.bf16.mxu0 %v5177_v1 }
 0x7f4   :  { %v3430_v9 = vunpack.c.l.bf16 %v3429_v7 }
 0x7f6   :  { %v3431_v11 = vsel %vm493_vm7, %v3430_v9, 0.0 }
 0x7f7   :  { %3432 = vadd.xlane.f32.xlu1 %v3431_v11 }
 0x81b   :  { %v4358_v20 = vpop.f32.mrb[16].mxu1 }
 0x81c   :  { %v4987_v21 = vadd.f32 %v4358_v20, %v3911_v13  ;;  %v4974_v23 = vpop.f32.mrb[17].mxu1 }
 0x81e   :  { %v4362_v25 = vpack.c.bf16 %v4987_v21, %v4987_v21  ;;  %v4384_v21 = vsub.s32 7, %v5238_v4 }
 0x820   :  { %v4363_v26 = vunpack.c.l.bf16 %v4362_v25  ;;  %v5176_v25 = vld [vmem:[%s5811_s1] sm:$0xff] }
 0x822   :  { %v4364_v27 = vsel %vm493_vm7, %v4363_v26, 0.0 }
 0x823   :  { %4365 = vadd.xlane.f32.xlu0 %v4364_v27 }
 0x827   :  { %1559 = vadd.xlane.f32.xlu0 %v1558_v22 }
 0x858   :  { %v2494_v56 = vpop.xlane.xlu1 %2493 }
 0x859   :  { %v2495_v14 = vmul.f32 0.0625, %v2494_v56  ;;  %v4391_v56 = vrot.slane %v5472_v17, %v45_v10 }
 0x85b   :  { %v2496_v28 = vsub.f32 %v2491_v48, %v2495_v14 }
 0x85d   :  { %v2497_v29 = vmul.f32 %v2496_v28, %v2496_v28 }
 0x85f   :  { %v2498_v30 = vsel %vm493_vm7, %v2497_v29, 0.0 }
 0x860   :  { %2499 = vadd.xlane.f32.xlu0 %v2498_v30 }
 0x884   :  { %v3433_v31 = vpop.xlane.xlu1 %3432 }
 0x885   :  { %v3434_v50 = vmul.f32 0.0625, %v3433_v31 }
 0x887   :  { %v5738_v34 = vsub.f32 %v3430_v9, %v3434_v50 }
 0x889   :  { %v3436_v41 = vmul.f32 %v5738_v34, %v5738_v34 }
 0x88b   :  { %v3437_v43 = vsel %vm493_vm7, %v3436_v41, 0.0 }
 0x8b0   :  { %v4366_v32 = vpop.xlane.xlu0 %4365 }
 0x8b1   :  { %v4367_v33 = vmul.f32 0.0625, %v4366_v32 }
 0x8b3   :  { %v4368_v35 = vsub.f32 %v4363_v26, %v4367_v33 }
 0x8b4   :  { %v1560_v36 = vpop.xlane.xlu0 %1559 }
 0x8b5   :  { %v1562_v37 = vmul.f32 0.0625, %v1560_v36  ;;  %v4369_v38 = vmul.f32 %v4368_v35, %v4368_v35 }
 0x8b7   :  { %v1563_v55 = vsub.f32 %v1557_v42, %v1562_v37  ;;  %v4370_v40 = vsel %vm493_vm7, %v4369_v38, 0.0 }
 0x8b8   :  { %4371 = vadd.xlane.f32.xlu1 %v4370_v40 }
 0x8b9   :  { %v1564_v5 = vmul.f32 %v1563_v55, %v1563_v55 }
 0x8bb   :  { %v1565_v44 = vsel %vm493_vm7, %v1564_v5, 0.0 }
 0x8bc   :  { %3438 = vadd.xlane.f32.xlu1 %v3437_v43  ;;  %1566 = vadd.xlane.f32.xlu0 %v1565_v44 }
 0x8ed   :  { %v2500_v45 = vpop.xlane.xlu0 %2499 }
 0x8ee   :  { %v2501_v51 = vmul.f32 0.0625, %v2500_v45 }
 0x8f0   :  { %v2502_v53 = vadd.f32 0.00064, %v2501_v51 }
 0x8f2   :  { %5162 = vrsqrt.f32 %v2502_v53 }
 0x8f3   :  { %5164 = vrcp.f32 %v477_v52 }
 0x8f4   :  { %5166 = vpow2.f32 %v472_v61 }
 0x8fc   :  { %v5163_v54 = vpop.eup %5162 }
 0x8fd   :  { %v2504_v57 = vmul.f32 %v5163_v54, %v2496_v28  ;;  %v5165_v58 = vpop.eup %5164  ;;  %v5187_v54 = vmov 1966171168  }
 0x8fe   :  { %v481_v59 = vmul.f32 %v5165_v58, %v5424_v16  ;;  %v5167_v62 = vpop.eup %5166  ;;  %v5139_v16 = vld [vmem:[%s5815_s6 + $0x8] sm:$0xff]  }
 0x8ff   :  { %2506 = vrot.lane.b32.xlu0 %v2504_v57, %s5186_s18  ;;  %v476_v48 = vadd.f32 1.0, %v5167_v62  ;;  %4978 = vmatpush3.bf16.msra.mxu0 %v5139_v16  ;;  %v4502_v57 = vunpack.c.l.s4 %v5187_v54 }
 0x901   :  { %v4503_v60 = vunpack.c.0.s8 %v4502_v57 }
 0x903   :  { %4398 = vrot.lane.b32.xlu0 %v481_v59, %s5182_s26  ;;  %v4506_v3 = vsub.s32 %v4503_v60, %v5238_v4 }
 0x945   :  { %v4372_v63 = vpop.xlane.xlu1 %4371 }
 0x946   :  { %v4373_v2 = vmul.f32 0.0625, %v4372_v63 }
 0x948   :  { %v4374_v39 = vadd.f32 0.00064, %v4373_v2 }
 0x949   :  { %v1567_v9 = vpop.xlane.xlu0 %1566  ;;  %v3439_v13 = vpop.xlane.xlu1 %3438 }
 0x94a   :  { %5168 = vrsqrt.f32 %v4374_v39  ;;  %v1568_v11 = vmul.f32 0.0625, %v1567_v9  ;;  %v3440_v19 = vmul.f32 0.0625, %v3439_v13 }
 0x94b   :  { %5170 = vrcp.f32 %v476_v48 }
 0x94c   :  { %v1569_v18 = vadd.f32 0.00064, %v1568_v11  ;;  %v3441_v1 = vadd.f32 0.00064, %v3440_v19 }
 0x94e   :  { %5172 = vrsqrt.f32 %v1569_v18 }
 0x94f   :  { %5174 = vrsqrt.f32 %v3441_v1 }
 0x954   :  { %v5169_v15 = vpop.eup %5168 }
 0x955   :  { %v4376_v8 = vmul.f32 %v5169_v15, %v4368_v35  ;;  %v5171_v6 = vpop.eup %5170 }
 0x956   :  { %v480_v7 = vmul.f32 %v5171_v6, %v5422_v12  ;;  %v4385_v12 = vrot.slane %v5176_v25, %v4384_v21 }
 0x957   :  { %4378 = vrot.lane.b32.xlu1 %v4376_v8, %s5186_s18 }
 0x958   :  { %v5173_v20 = vpop.eup %5172 }
 0x959   :  { %v1571_v24 = vmul.f32 %v5173_v20, %v1563_v55  ;;  %v5175_v26 = vpop.eup %5174 }
 0x95a   :  { %v3443_v22 = vmul.f32 %v5175_v26, %v5738_v34 }
 0x95b   :  { %4396 = vrot.lane.b32.xlu1 %v480_v7, %s5182_s26 }
 0x971   :  { %v2507_v23 = vpop.permute.xlu0 %2506 }
 0x972   :  { %v2509_v42 = vsel %vm493_vm7, %v1571_v24, %v2507_v23 }
 0x973   :  { %v4386_v27 = vmul.f32 %v4385_v12, %v2509_v42 }
 0x975   :  { %v4392_v30 = vadd.f32 %v4391_v56, %v4386_v27  ;;  %v4399_v32 = vpop.permute.xlu0 %4398 }
 0x9c9   :  { %v4379_v14 = vpop.permute.xlu1 %4378 }
 0x9ca   :  { %v4381_v28 = vsel %vm493_vm7, %v3443_v22, %v4379_v14 }
 0x9cb   :  { %v4387_v29 = vmul.f32 %v4385_v12, %v4381_v28 }
 0x9cd   :  { %v4393_v31 = vadd.f32 %v4391_v56, %v4387_v29  ;;  %v4397_v50 = vpop.permute.xlu1 %4396 }
 0x9ce   :  { %v4402_v33 = vmul.f32 %v4397_v50, %v4392_v30 }
 0x9cf   :  { %v4403_v35 = vmul.f32 %v4399_v32, %v4393_v31 }
 0x9d1   :  { %v4408_v36 = vpack.c.bf16 %v4403_v35, %v4402_v33 }
 0x9d3   :  { %4980 = vmatmul.mubr.msk.bf16.vlgmr.msra.gmra.mrb[16].mxu0 %vm68_vm2, %v4408_v36 }
 0xaa6   :  { %v4458_v37 = vpop.f32.mrb[16].mxu0 }
 0xaa7   :  { %v4981_v38 = vpop.f32.mrb[17].mxu0  ;;  %v4470_v34 = vrot.slane %v4458_v37, 2  ;;  %v4466_v55 = vrot.slane %v4458_v37, 1  ;;  %v4480_v17 = vrot.slane %v4458_v37, 5  ;;  %v4474_v41 = vrot.slane %v4458_v37, 3 }
 0xaa8   :  { %v4461_v40 = vpop.f32.mrb[18].mxu0  ;;  %v4488_v5 = vrot.slane %v4458_v37, 7  ;;  %v4484_v43 = vrot.slane %v4458_v37, 6  ;;  %v4478_v62 = vrot.slane %v4458_v37, 4 }
 0xaa9   :  { %4471 = vrot.lane.b32.xlu0 %v4470_v34, %s5180_s3  ;;  %4467 = vrot.lane.b32.xlu1 %v4466_v55, %s5182_s26  ;;  %v4982_v10 = vpop.f32.mrb[19].mxu0  ;;  %v4526_v44 = vrot.slane %v4461_v40, 2  ;;  %v4522_v46 = vrot.slane %v4461_v40, 1  ;;  %v4536_v47 = vrot.slane %v4461_v40, 5  ;;  %v4530_v49 = vrot.slane %v4461_v40, 3 }
 0xaaa   :  { %v4544_v45 = vrot.slane %v4461_v40, 7  ;;  %v4540_v51 = vrot.slane %v4461_v40, 6  ;;  %v4534_v20 = vrot.slane %v4461_v40, 4 }
 0xaad   :  { %4481 = vrot.lane.b32.xlu0 %v4480_v17, %s5182_s26  ;;  %4475 = vrot.lane.b32.xlu1 %v4474_v41, %s5181_s19 }
 0xab1   :  { %4489 = vrot.lane.b32.xlu0 %v4488_v5, %s5181_s19  ;;  %4485 = vrot.lane.b32.xlu1 %v4484_v43, %s5180_s3 }
 0xab5   :  { %4527 = vrot.lane.b32.xlu0 %v4526_v44, %s5180_s3  ;;  %4523 = vrot.lane.b32.xlu1 %v4522_v46, %s5182_s26 }
 0xab9   :  { %4537 = vrot.lane.b32.xlu0 %v4536_v47, %s5182_s26  ;;  %4531 = vrot.lane.b32.xlu1 %v4530_v49, %s5181_s19 }
 0xabd   :  { %4545 = vrot.lane.b32.xlu0 %v4544_v45, %s5181_s19  ;;  %4541 = vrot.lane.b32.xlu1 %v4540_v51, %s5180_s3 }
 0xb1b   :  { %v4472_v52 = vpop.permute.xlu0 %4471  ;;  %v4468_v53 = vpop.permute.xlu1 %4467 }
 0xb1c   :  { %v4492_v61 = vsel %vm68_vm2, %v4458_v37, %v4468_v53 }
 0xb1d   :  { %v4493_v39 = vsel %vm296_vm5, %v4492_v61, %v4472_v52 }
 0xb1f   :  { %v4482_v58 = vpop.permute.xlu0 %4481  ;;  %v4476_v59 = vpop.permute.xlu1 %4475 }
 0xb20   :  { %v4495_v63 = vsel %vm68_vm2, %v4478_v62, %v4482_v58  ;;  %v4494_v15 = vsel %vm299_vm6, %v4493_v39, %v4476_v59 }
 0xb23   :  { %v4490_v2 = vpop.permute.xlu0 %4489  ;;  %v4486_v48 = vpop.permute.xlu1 %4485 }
 0xb24   :  { %v4496_v16 = vsel %vm296_vm5, %v4495_v63, %v4486_v48 }
 0xb25   :  { %v4497_v8 = vsel %vm299_vm6, %v4496_v16, %v4490_v2 }
 0xb26   :  { %v4500_v6 = vcombine.low %v4494_v15, %v4497_v8 }
 0xb27   :  { %v4528_v7 = vpop.permute.xlu0 %4527  ;;  %v4524_v9 = vpop.permute.xlu1 %4523 }
 0xb28   :  { %v4507_v11 = vrot.slane %v4500_v6, %v4506_v3  ;;  %v4548_v4 = vsel %vm68_vm2, %v4461_v40, %v4524_v9 }
 0xb29   :  { %v4549_v0 = vsel %vm296_vm5, %v4548_v4, %v4528_v7 }
 0xb2a   :  { %v4514_v18 = vrot.slane %v4507_v11, %v4506_v3 }
 0xb2b   :  { %v4538_v19 = vpop.permute.xlu0 %4537  ;;  %v4532_v1 = vpop.permute.xlu1 %4531 }
 0xb2c   :  { %4520 = vst.msk [vmem:[%s5816_s7] sm:$0x3] %vm5789_vm11, %v4514_v18  ;;  %v4551_v21 = vsel %vm68_vm2, %v4534_v20, %v4538_v19  ;;  %v4550_v12 = vsel %vm299_vm6, %v4549_v0, %v4532_v1 }
 0xb2f   :  { %v4546_v23 = vpop.permute.xlu0 %4545  ;;  %v4542_v24 = vpop.permute.xlu1 %4541 }
 0xb30   :  { %v4552_v25 = vsel %vm296_vm5, %v4551_v21, %v4542_v24 }
 0xb31   :  { %v4553_v26 = vsel %vm299_vm6, %v4552_v25, %v4546_v23 }
 0xb32   :  { %v4556_v42 = vcombine.low %v4550_v12, %v4553_v26 }
 0xb34   :  { %v4563_v27 = vrot.slane %v4556_v42, %v4506_v3 }
 0xb36   :  { %v4570_v22 = vrot.slane %v4563_v27, %v4506_v3 }
 0xb38   :  { %4616 = vst.msk [vmem:[%s5816_s7 + $0x2] sm:$0x3] %vm5789_vm11, %v4570_v22 }

</bundles_post_ra>
